<compile_context>
chip_gen: v6e
topology: v6e:2x2x1
jax: 0.10.0
libtpu: 0.0.40
codegen_flags: <defaults>
</compile_context>

<pallas_src>
import functools

import jax
import jax.numpy as jnp
from jax.experimental import pallas as pl
from jax.experimental.pallas import tpu as pltpu

LANE = 128


def _round_up(x, m):
    return ((x + m - 1) // m) * m


def _pool_in_bf16():
    """bf16 pooling math only on chips with a bf16 VPU (v6e / v7x)."""
    try:
        kind = jax.devices()[0].device_kind.lower()
    except Exception:
        return False
    return ("v6" in kind) or ("v7" in kind) or ("7x" in kind)


def pocket_encoder_kernel(x_ref, seg_ref, cnt_ref, w_ref, b_ref,
                          out_ref, sum_acc, max_acc, *, pool_bf16):
    P = w_ref.shape[1]            # padded feature width (multiple of 128)
    b_pad = out_ref.shape[0]      # padded number of graphs (multiple of 8)
    t = pl.program_id(0)

    @pl.when(t == 0)
    def _init():
        sum_acc[...] = jnp.zeros(sum_acc.shape, sum_acc.dtype)
        max_acc[...] = jnp.full(max_acc.shape, -jnp.inf, max_acc.dtype)

    # ---- atom_processor: Linear -> ReLU -> Linear -> ReLU -------------------
    # bf16 operands on the MXU, f32 accumulation; biases added in f32.
    x = x_ref[...]                                   # [TILE_N, P] bf16
    w1 = w_ref[0 * P:1 * P, :]                       # [P, P] bf16
    w2 = w_ref[1 * P:2 * P, :]
    b1 = b_ref[0:1, :]                               # [1, P] f32
    b2 = b_ref[1:2, :]

    h1 = jnp.dot(x, w1, preferred_element_type=jnp.float32) + b1
    h1 = jnp.maximum(h1, 0.0)
    h2 = jnp.dot(h1.astype(jnp.bfloat16), w2,
                 preferred_element_type=jnp.float32) + b2
    h2 = jnp.maximum(h2, 0.0)                        # [TILE_N, P] f32
    h2_bf16 = h2.astype(jnp.bfloat16)

    # ---- global_mean_pool accumulation (bf16 one-hot matmul, f32 acc) -------
    sum_acc[...] += jnp.dot(seg_ref[...], h2_bf16,
                            preferred_element_type=jnp.float32)

    # ---- global_max_pool accumulation ---------------------------------------
    # Graph id rides the last (zero-weight) column of x; -1 marks padding atoms.
    # (bf16 graph ids are exact for < 256 graphs — asserted in the wrapper.)
    gid = x[:, P - 1:P]                              # [TILE_N, 1] bf16
    if pool_bf16:
        h_pool = h2_bf16
        neg_inf = jnp.asarray(-jnp.inf, jnp.bfloat16)
    else:
        gid = gid.astype(jnp.float32)
        h_pool = h2
        neg_inf = jnp.asarray(-jnp.inf, jnp.float32)

    # TODO(synk): for large b_pad, replace this static unroll with a
    # lax.fori_loop over a scalar-prefetched per-tile [gid_lo, gid_hi] range
    # (requires sorted pocket_batch) to skip graphs absent from the tile.
    tile_rows = []
    for b in range(b_pad):                           # b_pad is small & static
        masked = jnp.where(gid == b, h_pool, neg_inf)            # [TILE_N, P]
        tile_rows.append(jnp.max(masked, axis=0, keepdims=True)) # [1, P]
    tile_max = jnp.concatenate(tile_rows, axis=0).astype(jnp.float32)
    # Single full-block (unmasked) accumulator update instead of b_pad RMWs.
    max_acc[...] = jnp.maximum(max_acc[...], tile_max)

    # ---- finalize on the last atom tile: global MLP + store -----------------
    @pl.when(t == pl.num_programs(0) - 1)
    def _finalize():
        cnt = cnt_ref[...]                           # [B_pad, 1] f32
        g_mean = sum_acc[...] / jnp.maximum(cnt, 1.0)    # exact (runs once)
        g_max = jnp.where(cnt > 0.0, max_acc[...], 0.0)  # empty-graph guard
        combined = (g_mean + g_max).astype(jnp.bfloat16)

        w3 = w_ref[2 * P:3 * P, :]
        w4 = w_ref[3 * P:4 * P, :]
        b3 = b_ref[2:3, :]
        b4 = b_ref[3:4, :]

        g1 = jnp.dot(combined, w3, preferred_element_type=jnp.float32) + b3
        g1 = jnp.maximum(g1, 0.0)
        out = jnp.dot(g1.astype(jnp.bfloat16), w4,
                      preferred_element_type=jnp.float32) + b4
        out_ref[...] = out.astype(out_ref.dtype)     # lane-dense [B_pad, P] store


def simple_pocket_encoder(pocket_features, pocket_pos, pocket_edge_index,
                          pocket_batch, params, num_graphs,
                          max_atoms=1000, tile_n=None):
    """JAX wrapper mirroring SimplePocketEncoder.forward.

    pocket_pos and pocket_edge_index are accepted for signature parity but are
    unused in the reference forward pass (same as the PyTorch module).
    """
    del pocket_pos, pocket_edge_index
    # TODO(synk): torch.randperm subsampling for N > max_atoms is not implemented.
    assert pocket_features.shape[0] <= max_atoms
    # Graph ids are carried in a bf16 feature column -> exact only for < 256.
    assert num_graphs <= 256

    (w1, b1, w2, b2, w3, b3, w4, b4) = params
    d_in, hidden = w1.shape
    d_out = w4.shape[1]

    x = pocket_features.astype(jnp.float32)
    n = x.shape[0]

    # Lane-dense shared padded width (+1 reserves a zero-weight column of w1
    # for the stashed graph-id) and padded extents.
    P = _round_up(max(d_in + 1, hidden, d_out), LANE)
    # Adaptive atom tile: one tile for small N, up to 512 rows for larger N
    # (512x128 bf16 = 128 KiB, trivially within VMEM even double-buffered).
    if tile_n is None:
        tile_n = min(512, _round_up(max(n, 1), LANE))
    tile_n = max(LANE, _round_up(tile_n, LANE))
    n_pad = _round_up(max(n, tile_n), tile_n)
    b_pad = _round_up(max(num_graphs, 8), 8)

    def pad2(a):
        return jnp.pad(a, ((0, P - a.shape[0]), (0, P - a.shape[1])))

    # Packed, lane-dense weight slab (bf16) + bias slab (f32): 2 DMAs, not 8.
    w_slab = jnp.concatenate([pad2(w1), pad2(w2), pad2(w3), pad2(w4)],
                             axis=0).astype(jnp.bfloat16)              # [4P, P]
    b_slab = jnp.zeros((8, P), jnp.float32)
    b_slab = b_slab.at[0, :hidden].set(b1[0])
    b_slab = b_slab.at[1, :hidden].set(b2[0])
    b_slab = b_slab.at[2, :hidden].set(b3[0])
    b_slab = b_slab.at[3, :d_out].set(b4[0])

    # Atom features zero-padded, graph-id stashed in the last (zero-weight)
    # column, pre-cast to bf16 (halves streamed bytes, one DMA per tile).
    batch = pocket_batch.astype(jnp.int32)
    x_p = jnp.pad(x, ((0, n_pad - n), (0, P - d_in)))
    gid_col = jnp.pad(batch.astype(jnp.float32), (0, n_pad - n),
                      constant_values=-1.0)
    x_p = x_p.at[:, P - 1].set(gid_col).astype(jnp.bfloat16)

    # One-hot segment matrix in bf16 (0/1 exact) + per-graph counts (f32).
    seg = (batch[None, :] == jnp.arange(b_pad, dtype=jnp.int32)[:, None]
           ).astype(jnp.bfloat16)                                      # [b_pad, n]
    seg = jnp.pad(seg, ((0, 0), (0, n_pad - n)))
    counts = jnp.zeros((b_pad,), jnp.float32).at[batch].add(1.0).reshape(b_pad, 1)

    # Explicit VMEM budget from the real footprint (never below the default
    # scoped limit) so larger hidden dims remain safe on v7x's 64 MiB VMEM.
    vmem_bytes = (2 * tile_n * P * 2            # x tile, double-buffered bf16
                  + 2 * b_pad * tile_n * 2      # seg tile, double-buffered bf16
                  + 2 * 4 * P * P * 2           # weight slab
                  + 2 * 8 * P * 4               # bias slab
                  + 2 * b_pad * LANE * 4        # counts (lane-padded)
                  + 2 * b_pad * P * 4           # output
                  + 2 * b_pad * P * 4)          # scratch accumulators
    vmem_limit = int(min(100 * 2**20, max(32 * 2**20, 2 * vmem_bytes)))

    kernel = functools.partial(pocket_encoder_kernel, pool_bf16=_pool_in_bf16())

    grid = (n_pad // tile_n,)
    # TODO(synk): w_slab/b_slab/counts never change block index — single-buffer
    # them (pipeline_mode=pl.Buffered(1)) when hidden_dim scales into MiB range.
    out_pad = pl.pallas_call(
        kernel,
        out_shape=jax.ShapeDtypeStruct((b_pad, P), jnp.float32),
        grid_spec=pltpu.PrefetchScalarGridSpec(
            num_scalar_prefetch=0,
            grid=grid,
            in_specs=[
                pl.BlockSpec((tile_n, P), lambda t: (t, 0)),       # x tile (+gid)
                pl.BlockSpec((b_pad, tile_n), lambda t: (0, t)),   # seg tile (bf16)
                pl.BlockSpec((b_pad, 1), lambda t: (0, 0)),        # counts
                pl.BlockSpec((4 * P, P), lambda t: (0, 0)),        # weight slab
                pl.BlockSpec((8, P), lambda t: (0, 0)),            # bias slab
            ],
            out_specs=pl.BlockSpec((b_pad, P), lambda t: (0, 0)),
            scratch_shapes=[pltpu.VMEM((b_pad, P), jnp.float32),   # seg-sum acc
                            pltpu.VMEM((b_pad, P), jnp.float32)],  # seg-max acc
        ),
        # Atom-tile axis is a reduction -> "arbitrary".
        # TODO(synk): on v7x, shard atom tiles across the two TensorCores with
        # per-core partial accumulators + a tiny combine pass for large N.
        compiler_params=pltpu.CompilerParams(
            dimension_semantics=("arbitrary",),
            vmem_limit_bytes=vmem_limit),
    )(x_p, seg, counts, w_slab, b_slab)

    return out_pad[:num_graphs, :d_out]


def init_params(key, input_dim, hidden_dim, output_dim):
    """Deterministic synthetic parameters. Weights stored as [in, out]."""
    ks = jax.random.split(key, 8)

    def lin(kw, kb, fan_in, fan_out):
        scale = 1.0 / jnp.sqrt(jnp.float32(fan_in))
        w = jax.random.uniform(kw, (fan_in, fan_out), jnp.float32, -scale, scale)
        b = jax.random.uniform(kb, (1, fan_out), jnp.float32, -scale, scale)
        return w, b

    w1, b1 = lin(ks[0], ks[1], input_dim, hidden_dim)
    w2, b2 = lin(ks[2], ks[3], hidden_dim, hidden_dim)
    w3, b3 = lin(ks[4], ks[5], hidden_dim, hidden_dim)
    w4, b4 = lin(ks[6], ks[7], hidden_dim, output_dim)
    return (w1, b1, w2, b2, w3, b3, w4, b4)


if __name__ == "__main__":
    # Small shapes consistent with the module's forward signature.
    N_pocket = 8       # number of pocket atoms
    input_dim = 16
    hidden_dim = 32
    output_dim = 16
    num_graphs = 2     # batch size
    E_pocket = 12

    key = jax.random.PRNGKey(0)
    k_feat, k_pos, k_param = jax.random.split(key, 3)

    pocket_features = jax.random.normal(k_feat, (N_pocket, input_dim), jnp.float32)
    pocket_pos = jax.random.normal(k_pos, (N_pocket, 3), jnp.float32)          # unused
    pocket_edge_index = jnp.zeros((2, E_pocket), jnp.int32)                    # unused
    pocket_batch = jnp.array([0, 0, 0, 0, 1, 1, 1, 1], jnp.int32)              # [N_pocket]

    params = init_params(k_param, input_dim, hidden_dim, output_dim)

    out = simple_pocket_encoder(pocket_features, pocket_pos, pocket_edge_index,
                                pocket_batch, params, num_graphs)
    jax.block_until_ready(out)

    # Pure-JAX f32 reference of the same math (kernel uses bf16 matmul / pooling
    # operands with f32 accumulation, so compare with a moderate tolerance).
    def ref(x, batch, params):
        (w1, b1, w2, b2, w3, b3, w4, b4) = params
        h = jnp.maximum(x @ w1 + b1, 0.0)
        h = jnp.maximum(h @ w2 + b2, 0.0)
        seg = (batch[None, :] == jnp.arange(num_graphs)[:, None]).astype(jnp.float32)
        cnt = jnp.maximum(seg.sum(-1, keepdims=True), 1.0)
        g_mean = (seg @ h) / cnt
        g_max = jnp.max(jnp.where(seg[:, :, None] > 0, h[None], -jnp.inf), axis=1)
        g_max = jnp.where(seg.sum(-1, keepdims=True) > 0, g_max, 0.0)
        g = g_mean + g_max
        g = jnp.maximum(g @ w3 + b3, 0.0)
        return g @ w4 + b4

    expected = ref(pocket_features, pocket_batch, params)
    assert out.shape == (num_graphs, output_dim)
    assert jnp.allclose(out, expected, atol=5e-2, rtol=5e-2), (
        float(jnp.max(jnp.abs(out - expected))))
    print("KERNEL_OK")
</pallas_src>

<mosaic_0001>
module attributes {stable_mosaic.version = 11 : i64} {
  func.func @pocket_encoder_kernel(%arg0: i32, %arg1: memref<128x128xbf16, #tpu.memory_space<vmem>>, %arg2: memref<8x128xbf16, #tpu.memory_space<vmem>>, %arg3: memref<8x1xf32, #tpu.memory_space<vmem>>, %arg4: memref<512x128xbf16, #tpu.memory_space<vmem>>, %arg5: memref<8x128xf32, #tpu.memory_space<vmem>>, %arg6: memref<8x128xf32, #tpu.memory_space<vmem>>, %arg7: memref<8x128xf32, #tpu.memory_space<vmem>>, %arg8: memref<8x128xf32, #tpu.memory_space<vmem>>) attributes {dimension_semantics = [#tpu.dimension_semantics<arbitrary>], iteration_bounds = array<i64: 1>, scalar_prefetch = 0 : i64, scratch_operands = 2 : i64, tpu.core_type = #tpu.core_type<tc>, window_params = [{transform_indices = @transform_0, window_bounds = array<i64: 128, 128>}, {transform_indices = @transform_1, window_bounds = array<i64: 8, 128>}, {pipeline_mode = #tpu.pipeline_mode<synchronous>, transform_indices = @transform_2, window_bounds = array<i64: 8, 1>}, {pipeline_mode = #tpu.pipeline_mode<synchronous>, transform_indices = @transform_3, window_bounds = array<i64: 512, 128>}, {pipeline_mode = #tpu.pipeline_mode<synchronous>, transform_indices = @transform_4, window_bounds = array<i64: 8, 128>}, {pipeline_mode = #tpu.pipeline_mode<synchronous>, transform_indices = @transform_5, window_bounds = array<i64: 8, 128>}]} {
    %c0_i32 = arith.constant 0 : i32
    %0 = arith.cmpi eq, %arg0, %c0_i32 : i32
    %1 = arith.extui %0 : i1 to i32
    %c0_i32_0 = arith.constant 0 : i32
    %2 = arith.cmpi ne, %1, %c0_i32_0 : i32
    scf.if %2 {
      %cst_48 = arith.constant 0.000000e+00 : f32
      %98 = vector.broadcast %cst_48 : f32 to vector<8x128xf32>
      %c0_49 = arith.constant 0 : index
      %c0_50 = arith.constant 0 : index
      %99 = vector.load %arg7[%c0_49, %c0_50] : memref<8x128xf32, #tpu.memory_space<vmem>>, vector<8x128xf32>
      tpu.vector_store %arg7[%c0_49, %c0_50], %98 {strides = array<i32>} : memref<8x128xf32, #tpu.memory_space<vmem>>, vector<8x128xf32>,
      %cst_51 = arith.constant 0xFF800000 : f32
      %100 = vector.broadcast %cst_51 : f32 to vector<8x128xf32>
      %c0_52 = arith.constant 0 : index
      %c0_53 = arith.constant 0 : index
      %101 = vector.load %arg8[%c0_52, %c0_53] : memref<8x128xf32, #tpu.memory_space<vmem>>, vector<8x128xf32>
      tpu.vector_store %arg8[%c0_52, %c0_53], %100 {strides = array<i32>} : memref<8x128xf32, #tpu.memory_space<vmem>>, vector<8x128xf32>,
    } else {
    }
    %c0 = arith.constant 0 : index
    %c0_1 = arith.constant 0 : index
    %3 = vector.load %arg1[%c0, %c0_1] : memref<128x128xbf16, #tpu.memory_space<vmem>>, vector<128x128xbf16>
    %c0_2 = arith.constant 0 : index
    %c0_3 = arith.constant 0 : index
    %4 = vector.load %arg4[%c0_2, %c0_3] : memref<512x128xbf16, #tpu.memory_space<vmem>>, vector<128x128xbf16>
    %c128 = arith.constant 128 : index
    %c0_4 = arith.constant 0 : index
    %5 = vector.load %arg4[%c128, %c0_4] : memref<512x128xbf16, #tpu.memory_space<vmem>>, vector<128x128xbf16>
    %c0_5 = arith.constant 0 : index
    %c0_6 = arith.constant 0 : index
    %6 = vector.load %arg5[%c0_5, %c0_6] : memref<8x128xf32, #tpu.memory_space<vmem>>, vector<1x128xf32>
    %c1 = arith.constant 1 : index
    %c0_7 = arith.constant 0 : index
    %7 = vector.load %arg5[%c1, %c0_7] : memref<8x128xf32, #tpu.memory_space<vmem>>, vector<1x128xf32>
    %cst = arith.constant dense<0.000000e+00> : vector<128x128xf32>
    %8 = tpu.matmul %3, %4, %cst {dimension_numbers = #tpu.dot_dimension_numbers<[1], [0], [0], [1], [0, 0, 1, 1], [], []>} : vector<128x128xbf16>, vector<128x128xbf16>, vector<128x128xf32> -> vector<128x128xf32>
    %9 = vector.broadcast %6 : vector<1x128xf32> to vector<128x128xf32>
    %10 = arith.addf %8, %9 : vector<128x128xf32>
    %cst_8 = arith.constant 0.000000e+00 : f32
    %11 = vector.broadcast %cst_8 : f32 to vector<128x128xf32>
    %12 = arith.maximumf %10, %11 : vector<128x128xf32>
    %13 = arith.truncf %12 : vector<128x128xf32> to vector<128x128xbf16>
    %cst_9 = arith.constant dense<0.000000e+00> : vector<128x128xf32>
    %14 = tpu.matmul %13, %5, %cst_9 {dimension_numbers = #tpu.dot_dimension_numbers<[1], [0], [0], [1], [0, 0, 1, 1], [], []>} : vector<128x128xbf16>, vector<128x128xbf16>, vector<128x128xf32> -> vector<128x128xf32>
    %15 = vector.broadcast %7 : vector<1x128xf32> to vector<128x128xf32>
    %16 = arith.addf %14, %15 : vector<128x128xf32>
    %cst_10 = arith.constant 0.000000e+00 : f32
    %17 = vector.broadcast %cst_10 : f32 to vector<128x128xf32>
    %18 = arith.maximumf %16, %17 : vector<128x128xf32>
    %19 = arith.truncf %18 : vector<128x128xf32> to vector<128x128xbf16>
    %c0_11 = arith.constant 0 : index
    %c0_12 = arith.constant 0 : index
    %20 = vector.load %arg7[%c0_11, %c0_12] : memref<8x128xf32, #tpu.memory_space<vmem>>, vector<8x128xf32>
    %c0_13 = arith.constant 0 : index
    %c0_14 = arith.constant 0 : index
    %21 = vector.load %arg2[%c0_13, %c0_14] : memref<8x128xbf16, #tpu.memory_space<vmem>>, vector<8x128xbf16>
    %cst_15 = arith.constant dense<0.000000e+00> : vector<8x128xf32>
    %22 = tpu.matmul %21, %19, %cst_15 {dimension_numbers = #tpu.dot_dimension_numbers<[1], [0], [0], [1], [0, 0, 1, 1], [], []>} : vector<8x128xbf16>, vector<128x128xbf16>, vector<8x128xf32> -> vector<8x128xf32>
    %23 = arith.addf %20, %22 : vector<8x128xf32>
    %c0_16 = arith.constant 0 : index
    %c0_17 = arith.constant 0 : index
    %24 = vector.load %arg7[%c0_16, %c0_17] : memref<8x128xf32, #tpu.memory_space<vmem>>, vector<8x128xf32>
    tpu.vector_store %arg7[%c0_16, %c0_17], %23 {strides = array<i32>} : memref<8x128xf32, #tpu.memory_space<vmem>>, vector<8x128xf32>,
    %25 = vector.extract_strided_slice %3 {offsets = [0, 127], sizes = [128, 1], strides = [1, 1]} : vector<128x128xbf16> to vector<128x1xbf16>
    %26 = arith.extf %25 : vector<128x1xbf16> to vector<128x1xf32>
    %cst_18 = arith.constant 0.000000e+00 : f32
    %27 = vector.broadcast %cst_18 : f32 to vector<128x1xf32>
    %28 = arith.cmpf oeq, %26, %27 : vector<128x1xf32>
    %cst_19 = arith.constant 0xFF800000 : f32
    %29 = vector.shape_cast %28 : vector<128x1xi1> to vector<128x1xi1>
    %30 = vector.broadcast %29 : vector<128x1xi1> to vector<128x128xi1>
    %31 = vector.broadcast %cst_19 : f32 to vector<128x128xf32>
    %32 = arith.select %30, %18, %31 : vector<128x128xi1>, vector<128x128xf32>
    %cst_20 = arith.constant dense<0xFF800000> : vector<128xf32>
    %33 = vector.multi_reduction <maximumf>, %32, %cst_20 [0] : vector<128x128xf32> to vector<128xf32>
    %34 = vector.shape_cast %33 : vector<128xf32> to vector<1x128xf32>
    %cst_21 = arith.constant 1.000000e+00 : f32
    %35 = vector.broadcast %cst_21 : f32 to vector<128x1xf32>
    %36 = arith.cmpf oeq, %26, %35 : vector<128x1xf32>
    %cst_22 = arith.constant 0xFF800000 : f32
    %37 = vector.shape_cast %36 : vector<128x1xi1> to vector<128x1xi1>
    %38 = vector.broadcast %37 : vector<128x1xi1> to vector<128x128xi1>
    %39 = vector.broadcast %cst_22 : f32 to vector<128x128xf32>
    %40 = arith.select %38, %18, %39 : vector<128x128xi1>, vector<128x128xf32>
    %cst_23 = arith.constant dense<0xFF800000> : vector<128xf32>
    %41 = vector.multi_reduction <maximumf>, %40, %cst_23 [0] : vector<128x128xf32> to vector<128xf32>
    %42 = vector.shape_cast %41 : vector<128xf32> to vector<1x128xf32>
    %cst_24 = arith.constant 2.000000e+00 : f32
    %43 = vector.broadcast %cst_24 : f32 to vector<128x1xf32>
    %44 = arith.cmpf oeq, %26, %43 : vector<128x1xf32>
    %cst_25 = arith.constant 0xFF800000 : f32
    %45 = vector.shape_cast %44 : vector<128x1xi1> to vector<128x1xi1>
    %46 = vector.broadcast %45 : vector<128x1xi1> to vector<128x128xi1>
    %47 = vector.broadcast %cst_25 : f32 to vector<128x128xf32>
    %48 = arith.select %46, %18, %47 : vector<128x128xi1>, vector<128x128xf32>
    %cst_26 = arith.constant dense<0xFF800000> : vector<128xf32>
    %49 = vector.multi_reduction <maximumf>, %48, %cst_26 [0] : vector<128x128xf32> to vector<128xf32>
    %50 = vector.shape_cast %49 : vector<128xf32> to vector<1x128xf32>
    %cst_27 = arith.constant 3.000000e+00 : f32
    %51 = vector.broadcast %cst_27 : f32 to vector<128x1xf32>
    %52 = arith.cmpf oeq, %26, %51 : vector<128x1xf32>
    %cst_28 = arith.constant 0xFF800000 : f32
    %53 = vector.shape_cast %52 : vector<128x1xi1> to vector<128x1xi1>
    %54 = vector.broadcast %53 : vector<128x1xi1> to vector<128x128xi1>
    %55 = vector.broadcast %cst_28 : f32 to vector<128x128xf32>
    %56 = arith.select %54, %18, %55 : vector<128x128xi1>, vector<128x128xf32>
    %cst_29 = arith.constant dense<0xFF800000> : vector<128xf32>
    %57 = vector.multi_reduction <maximumf>, %56, %cst_29 [0] : vector<128x128xf32> to vector<128xf32>
    %58 = vector.shape_cast %57 : vector<128xf32> to vector<1x128xf32>
    %cst_30 = arith.constant 4.000000e+00 : f32
    %59 = vector.broadcast %cst_30 : f32 to vector<128x1xf32>
    %60 = arith.cmpf oeq, %26, %59 : vector<128x1xf32>
    %cst_31 = arith.constant 0xFF800000 : f32
    %61 = vector.shape_cast %60 : vector<128x1xi1> to vector<128x1xi1>
    %62 = vector.broadcast %61 : vector<128x1xi1> to vector<128x128xi1>
    %63 = vector.broadcast %cst_31 : f32 to vector<128x128xf32>
    %64 = arith.select %62, %18, %63 : vector<128x128xi1>, vector<128x128xf32>
    %cst_32 = arith.constant dense<0xFF800000> : vector<128xf32>
    %65 = vector.multi_reduction <maximumf>, %64, %cst_32 [0] : vector<128x128xf32> to vector<128xf32>
    %66 = vector.shape_cast %65 : vector<128xf32> to vector<1x128xf32>
    %cst_33 = arith.constant 5.000000e+00 : f32
    %67 = vector.broadcast %cst_33 : f32 to vector<128x1xf32>
    %68 = arith.cmpf oeq, %26, %67 : vector<128x1xf32>
    %cst_34 = arith.constant 0xFF800000 : f32
    %69 = vector.shape_cast %68 : vector<128x1xi1> to vector<128x1xi1>
    %70 = vector.broadcast %69 : vector<128x1xi1> to vector<128x128xi1>
    %71 = vector.broadcast %cst_34 : f32 to vector<128x128xf32>
    %72 = arith.select %70, %18, %71 : vector<128x128xi1>, vector<128x128xf32>
    %cst_35 = arith.constant dense<0xFF800000> : vector<128xf32>
    %73 = vector.multi_reduction <maximumf>, %72, %cst_35 [0] : vector<128x128xf32> to vector<128xf32>
    %74 = vector.shape_cast %73 : vector<128xf32> to vector<1x128xf32>
    %cst_36 = arith.constant 6.000000e+00 : f32
    %75 = vector.broadcast %cst_36 : f32 to vector<128x1xf32>
    %76 = arith.cmpf oeq, %26, %75 : vector<128x1xf32>
    %cst_37 = arith.constant 0xFF800000 : f32
    %77 = vector.shape_cast %76 : vector<128x1xi1> to vector<128x1xi1>
    %78 = vector.broadcast %77 : vector<128x1xi1> to vector<128x128xi1>
    %79 = vector.broadcast %cst_37 : f32 to vector<128x128xf32>
    %80 = arith.select %78, %18, %79 : vector<128x128xi1>, vector<128x128xf32>
    %cst_38 = arith.constant dense<0xFF800000> : vector<128xf32>
    %81 = vector.multi_reduction <maximumf>, %80, %cst_38 [0] : vector<128x128xf32> to vector<128xf32>
    %82 = vector.shape_cast %81 : vector<128xf32> to vector<1x128xf32>
    %cst_39 = arith.constant 7.000000e+00 : f32
    %83 = vector.broadcast %cst_39 : f32 to vector<128x1xf32>
    %84 = arith.cmpf oeq, %26, %83 : vector<128x1xf32>
    %cst_40 = arith.constant 0xFF800000 : f32
    %85 = vector.shape_cast %84 : vector<128x1xi1> to vector<128x1xi1>
    %86 = vector.broadcast %85 : vector<128x1xi1> to vector<128x128xi1>
    %87 = vector.broadcast %cst_40 : f32 to vector<128x128xf32>
    %88 = arith.select %86, %18, %87 : vector<128x128xi1>, vector<128x128xf32>
    %cst_41 = arith.constant dense<0xFF800000> : vector<128xf32>
    %89 = vector.multi_reduction <maximumf>, %88, %cst_41 [0] : vector<128x128xf32> to vector<128xf32>
    %90 = vector.shape_cast %89 : vector<128xf32> to vector<1x128xf32>
    %91 = tpu.concatenate %34, %42, %50, %58, %66, %74, %82, %90 in 0 : vector<1x128xf32>, vector<1x128xf32>, vector<1x128xf32>, vector<1x128xf32>, vector<1x128xf32>, vector<1x128xf32>, vector<1x128xf32>, vector<1x128xf32> -> vector<8x128xf32>
    %c0_42 = arith.constant 0 : index
    %c0_43 = arith.constant 0 : index
    %92 = vector.load %arg8[%c0_42, %c0_43] : memref<8x128xf32, #tpu.memory_space<vmem>>, vector<8x128xf32>
    %93 = arith.maximumf %92, %91 : vector<8x128xf32>
    %c0_44 = arith.constant 0 : index
    %c0_45 = arith.constant 0 : index
    %94 = vector.load %arg8[%c0_44, %c0_45] : memref<8x128xf32, #tpu.memory_space<vmem>>, vector<8x128xf32>
    tpu.vector_store %arg8[%c0_44, %c0_45], %93 {strides = array<i32>} : memref<8x128xf32, #tpu.memory_space<vmem>>, vector<8x128xf32>,
    %c0_i32_46 = arith.constant 0 : i32
    %95 = arith.cmpi eq, %arg0, %c0_i32_46 : i32
    %96 = arith.extui %95 : i1 to i32
    %c0_i32_47 = arith.constant 0 : i32
    %97 = arith.cmpi ne, %96, %c0_i32_47 : i32
    scf.if %97 {
      %c0_48 = arith.constant 0 : index
      %c0_49 = arith.constant 0 : index
      %98 = vector.load %arg3[%c0_48, %c0_49] : memref<8x1xf32, #tpu.memory_space<vmem>>, vector<8x1xf32>
      %c0_50 = arith.constant 0 : index
      %c0_51 = arith.constant 0 : index
      %99 = vector.load %arg7[%c0_50, %c0_51] : memref<8x128xf32, #tpu.memory_space<vmem>>, vector<8x128xf32>
      %cst_52 = arith.constant 1.000000e+00 : f32
      %100 = vector.broadcast %cst_52 : f32 to vector<8x1xf32>
      %101 = arith.maximumf %98, %100 : vector<8x1xf32>
      %102 = vector.broadcast %101 : vector<8x1xf32> to vector<8x128xf32>
      %103 = arith.divf %99, %102 : vector<8x128xf32>
      %cst_53 = arith.constant 0.000000e+00 : f32
      %104 = vector.broadcast %cst_53 : f32 to vector<8x1xf32>
      %105 = arith.cmpf ogt, %98, %104 : vector<8x1xf32>
      %c0_54 = arith.constant 0 : index
      %c0_55 = arith.constant 0 : index
      %106 = vector.load %arg8[%c0_54, %c0_55] : memref<8x128xf32, #tpu.memory_space<vmem>>, vector<8x128xf32>
      %cst_56 = arith.constant 0.000000e+00 : f32
      %107 = vector.shape_cast %105 : vector<8x1xi1> to vector<8x1xi1>
      %108 = vector.broadcast %107 : vector<8x1xi1> to vector<8x128xi1>
      %109 = vector.broadcast %cst_56 : f32 to vector<8x128xf32>
      %110 = arith.select %108, %106, %109 : vector<8x128xi1>, vector<8x128xf32>
      %111 = arith.addf %103, %110 : vector<8x128xf32>
      %112 = arith.truncf %111 : vector<8x128xf32> to vector<8x128xbf16>
      %c256 = arith.constant 256 : index
      %c0_57 = arith.constant 0 : index
      %113 = vector.load %arg4[%c256, %c0_57] : memref<512x128xbf16, #tpu.memory_space<vmem>>, vector<128x128xbf16>
      %c384 = arith.constant 384 : index
      %c0_58 = arith.constant 0 : index
      %114 = vector.load %arg4[%c384, %c0_58] : memref<512x128xbf16, #tpu.memory_space<vmem>>, vector<128x128xbf16>
      %c2 = arith.constant 2 : index
      %c0_59 = arith.constant 0 : index
      %115 = vector.load %arg5[%c2, %c0_59] : memref<8x128xf32, #tpu.memory_space<vmem>>, vector<1x128xf32>
      %c3 = arith.constant 3 : index
      %c0_60 = arith.constant 0 : index
      %116 = vector.load %arg5[%c3, %c0_60] : memref<8x128xf32, #tpu.memory_space<vmem>>, vector<1x128xf32>
      %cst_61 = arith.constant dense<0.000000e+00> : vector<8x128xf32>
      %117 = tpu.matmul %112, %113, %cst_61 {dimension_numbers = #tpu.dot_dimension_numbers<[1], [0], [0], [1], [0, 0, 1, 1], [], []>} : vector<8x128xbf16>, vector<128x128xbf16>, vector<8x128xf32> -> vector<8x128xf32>
      %118 = vector.broadcast %115 : vector<1x128xf32> to vector<8x128xf32>
      %119 = arith.addf %117, %118 : vector<8x128xf32>
      %cst_62 = arith.constant 0.000000e+00 : f32
      %120 = vector.broadcast %cst_62 : f32 to vector<8x128xf32>
      %121 = arith.maximumf %119, %120 : vector<8x128xf32>
      %122 = arith.truncf %121 : vector<8x128xf32> to vector<8x128xbf16>
      %cst_63 = arith.constant dense<0.000000e+00> : vector<8x128xf32>
      %123 = tpu.matmul %122, %114, %cst_63 {dimension_numbers = #tpu.dot_dimension_numbers<[1], [0], [0], [1], [0, 0, 1, 1], [], []>} : vector<8x128xbf16>, vector<128x128xbf16>, vector<8x128xf32> -> vector<8x128xf32>
      %124 = vector.broadcast %116 : vector<1x128xf32> to vector<8x128xf32>
      %125 = arith.addf %123, %124 : vector<8x128xf32>
      %c0_64 = arith.constant 0 : index
      %c0_65 = arith.constant 0 : index
      %126 = vector.load %arg6[%c0_64, %c0_65] : memref<8x128xf32, #tpu.memory_space<vmem>>, vector<8x128xf32>
      tpu.vector_store %arg6[%c0_64, %c0_65], %125 {strides = array<i32>} : memref<8x128xf32, #tpu.memory_space<vmem>>, vector<8x128xf32>,
    } else {
    }
    return
  }
  func.func @transform_0(%arg0: i32) -> (i32, i32) {
    %c0_i32 = arith.constant 0 : i32
    %c0_i32_0 = arith.constant 0 : i32
    return %arg0, %c0_i32 : i32, i32
  }
  func.func @transform_1(%arg0: i32) -> (i32, i32) {
    %c0_i32 = arith.constant 0 : i32
    %c0_i32_0 = arith.constant 0 : i32
    return %c0_i32, %arg0 : i32, i32
  }
  func.func @transform_2(%arg0: i32) -> (i32, i32) {
    %c0_i32 = arith.constant 0 : i32
    %c0_i32_0 = arith.constant 0 : i32
    %c0_i32_1 = arith.constant 0 : i32
    return %c0_i32, %c0_i32_0 : i32, i32
  }
  func.func @transform_3(%arg0: i32) -> (i32, i32) {
    %c0_i32 = arith.constant 0 : i32
    %c0_i32_0 = arith.constant 0 : i32
    %c0_i32_1 = arith.constant 0 : i32
    return %c0_i32, %c0_i32_0 : i32, i32
  }
  func.func @transform_4(%arg0: i32) -> (i32, i32) {
    %c0_i32 = arith.constant 0 : i32
    %c0_i32_0 = arith.constant 0 : i32
    %c0_i32_1 = arith.constant 0 : i32
    return %c0_i32, %c0_i32_0 : i32, i32
  }
  func.func @transform_5(%arg0: i32) -> (i32, i32) {
    %c0_i32 = arith.constant 0 : i32
    %c0_i32_0 = arith.constant 0 : i32
    %c0_i32_1 = arith.constant 0 : i32
    return %c0_i32, %c0_i32_0 : i32, i32
  }
}

</mosaic_0001>

<bundles_post_ra>
// kernel: tpu_custom_call.1
= control target key start
LH: loop header
LB: loop body
LE: loop exit
PB: predicated region body
PF: predicated region fallthrough
CT: control target
= control target key end

     0   :  { %10 = vsyncpa [#allocation5], 0  ;;  %s3650_s0 = inlined_call_operand.hbm [shape: bf16[128,128], index: 0, kind: input, shape index: {}]   ;;  %s3651_s1 = inlined_call_operand.vmem [shape: bf16[8,128], index: 1, kind: input, shape index: {}]   ;;  %s3652_s2 = inlined_call_operand.vmem [shape: f32[8,1], index: 2, kind: input, shape index: {}]   ;;  %s3653_s3 = inlined_call_operand.hbm [shape: bf16[512,128], index: 3, kind: input, shape index: {}]   ;;  %s3654_s4 = inlined_call_operand.vmem [shape: f32[8,128], index: 4, kind: input, shape index: {}]   ;;  %s3655_s5 = inlined_call_operand.hbm [shape: f32[8,128], index: 5, kind: output, shape index: {}]  }
   0x1   :  { %11 = vsyncpa [#allocation8], 0 }
   0x2   :  { %12 = vsyncpa [#allocation6], 0  ;;  %s2257_s18 = smov [#allocation4]  }
   0x3   :  { %s18_s19 = sshll.u32 %s2257_s18, 4  ;;  %s19_s19 = int_to_ptr.vmem [resolvable:$true] %s18_s19 }
   0x4   :  { %s2199_s20 = scalar_lea.vmem %s19_s19, 1024  ;;  %p2204_p1 = scmp.lt.s32.totalorder %s19_s19, %s19_s19 }
   0x5   :  { %p2200_p0 = scmp.ne.s32.totalorder %s19_s19, %s2199_s20  ;;  %p2205_p2 = scmp.lt.s32.totalorder %s2199_s20, %s2199_s20 }
   0x7   :  { %p2206_p3 = por %p2205_p2, %p2204_p1 }
   0x9   :  { %p2207_p4 = pnand %p2206_p3, %p2200_p0 }
   0xb   :  { %2210 = shalt.err (!%p2207_p4)
}
   0xc   :  { %s2258_s21 = smov 64   ;;  %s2259_s22 = smov 4  }
   0xd   :  { %24 = dma.hbm_to_vmem [thread:$0]  %s3650_s0, 1024, %s19_s19, [#allocation5], %s2258_s21, %s2258_s21, %s2259_s22  }
   0xe   :  { %s2260_s25 = smov [#allocation7]  }
   0xf   :  { %s34_s26 = sshll.u32 %s2260_s25, 4  ;;  %s35_s26 = int_to_ptr.vmem [resolvable:$true] %s34_s26 }
  0x10   :  { %s2219_s27 = scalar_lea.vmem %s35_s26, 4096  ;;  %p2224_p6 = scmp.lt.s32.totalorder %s35_s26, %s35_s26 }
  0x11   :  { %p2220_p5 = scmp.ne.s32.totalorder %s35_s26, %s2219_s27  ;;  %p2225_p7 = scmp.lt.s32.totalorder %s2219_s27, %s2219_s27 }
  0x13   :  { %p2226_p8 = por %p2225_p7, %p2224_p6 }
  0x15   :  { %p2227_p9 = pnand %p2226_p8, %p2220_p5 }
  0x17   :  { %2230 = shalt.err (!%p2227_p9)
}
  0x18   :  { %40 = dma.hbm_to_vmem [thread:$0]  %s3653_s3, 4096, %s35_s26, [#allocation8], %s2258_s21, %s2258_s21, %s2259_s22  }
  0x19   :  { %2251 = dma.done.wait [#allocation5], 1024  }
  0x1a   :  { %2252 = vsyncadd [#allocation5], 4294966272 }
  0x1b   :  { %2253 = dma.done.wait [#allocation8], 4096  }
  0x1c   :  { %2254 = vsyncadd [#allocation8], 4294963200  ;;  %v2261_v0 = vmov 127   ;;  %v2141_v1 = vld [vmem:[#allocation7 + $0x38] sm:$0xff]   ;;  %v2142_v2 = vld [vmem:[#allocation7 + $0x30] sm:$0xff]   ;;  %v2262_v16 = vmov 0  }
  0x1d   :  { %2138 = vset.pattern.permute.xlu1 %v2261_v0  ;;  %2137 = vset.pattern.permute.xlu0 %v2261_v0  ;;  %v2143_v3 = vld [vmem:[#allocation7 + $0x28] sm:$0xff]   ;;  %v2144_v4 = vld [vmem:[#allocation7 + $0x20] sm:$0xff]   ;;  %v2145_v9 = vld [vmem:[#allocation7 + $0x18] sm:$0xff]   ;;  %s2265_s13 = smov [#allocation9]  }
  0x1e   :  { %2004 = vmatprep.subr.bf16.mxu0 %v2141_v1  ;;  %v56_v5 = vld [vmem:[#allocation4] sm:$0xff]   ;;  %v58_v8 = vld [vmem:[#allocation4 + $0x8] sm:$0xff]   ;;  %v60_v12 = vld [vmem:[#allocation4 + $0x10] sm:$0xff]   ;;  %s1891_s14 = sshll.u32 %s2265_s13, 4  ;;  %s1892_s14 = int_to_ptr.vmem [resolvable:$true] %s1891_s14 }
  0x1f   :  { %2005 = vmatpush3.bf16.msra.mxu0 %v2141_v1  ;;  %v2302_v6 = vunpack.c.l.bf16 %v56_v5  ;;  %v2304_v7 = vunpack.c.h.bf16 %v56_v5  ;;  %v2306_v10 = vunpack.c.l.bf16 %v58_v8  ;;  %v2308_v11 = vunpack.c.h.bf16 %v58_v8  ;;  %2020 = vmatprep.mubr.bf16.mxu0 %v56_v5  ;;  %v62_v15 = vld [vmem:[#allocation4 + $0x18] sm:$0xff]   ;;  %v2146_v21 = vld [vmem:[#allocation7 + $0x10] sm:$0xff]   ;;  %v2147_v26 = vld [vmem:[#allocation7 + $0x8] sm:$0xff]   ;;  %s2231_s15 = scalar_lea.vmem %s1892_s14, 128  ;;  %p2236_p11 = scmp.lt.s32.totalorder %s1892_s14, %s1892_s14 }
  0x20   :  { %2006 = vmatprep.subr.bf16.mxu0 %v2142_v2  ;;  %v2310_v13 = vunpack.c.l.bf16 %v60_v12  ;;  %v2312_v14 = vunpack.c.h.bf16 %v60_v12  ;;  %v2322_v22 = vunpack.c.l.bf16 %v62_v15  ;;  %v2324_v23 = vunpack.c.h.bf16 %v62_v15  ;;  %v2148_v29 = vld [vmem:[#allocation7] sm:$0xff]   ;;  %v66_v39 = vld [vmem:[#allocation4 + $0x28] sm:$0xff]   ;;  %v2353_v41 = vld [vmem:[#allocation4 + $0x30] sm:$0xff]   ;;  %p2232_p10 = scmp.ne.s32.totalorder %s1892_s14, %s2231_s15  ;;  %p2237_p12 = scmp.lt.s32.totalorder %s2231_s15, %s2231_s15 }
  0x21   :  { %vm562_vm0 = vcmp.eq.f32.partialorder %v2306_v10, 0.0  ;;  %vm560_vm1 = vcmp.eq.f32.partialorder %v2302_v6, 0.0  ;;  %vm563_vm2 = vcmp.eq.f32.partialorder %v2308_v11, 0.0  ;;  %vm561_vm3 = vcmp.eq.f32.partialorder %v2304_v7, 0.0  ;;  %v64_v35 = vld [vmem:[#allocation4 + $0x20] sm:$0xff]   ;;  %v2363_v45 = vld [vmem:[#allocation4 + $0x38] sm:$0xff]  }
  0x22   :  { %v578_v17 = vsel %vm562_vm0, 1, %v2262_v16  ;;  %v576_v18 = vsel %vm560_vm1, 1, %v2262_v16  ;;  %v579_v19 = vsel %vm563_vm2, 1, %v2262_v16  ;;  %v577_v20 = vsel %vm561_vm3, 1, %v2262_v16  ;;  %v2157_v47 = vld [vmem:[#allocation7 + $0x78] sm:$0xff]   ;;  %v2158_v52 = vld [vmem:[#allocation7 + $0x70] sm:$0xff]   ;;  %p2238_p13 = por %p2237_p12, %p2236_p11 }
  0x23   :  { %2007 = vmatpush3.bf16.msra.mxu0 %v2142_v2  ;;  %599 = vperm.xlu1 %2138, %v578_v17   ;;  %vm565_vm4 = vcmp.eq.f32.partialorder %v2312_v14, 0.0  ;;  %vm564_vm5 = vcmp.eq.f32.partialorder %v2310_v13, 0.0  ;;  %vm567_vm6 = vcmp.eq.f32.partialorder %v2324_v23, 0.0  ;;  %vm566_vm7 = vcmp.eq.f32.partialorder %v2322_v22, 0.0  ;;  %v2159_v57 = vld [vmem:[#allocation7 + $0x68] sm:$0xff]   ;;  %v2160_v60 = vld [vmem:[#allocation7 + $0x60] sm:$0xff]  }
  0x24   :  { %2008 = vmatprep.subr.bf16.mxu0 %v2143_v3  ;;  %593 = vperm.xlu0 %2137, %v576_v18   ;;  %v581_v24 = vsel %vm565_vm4, 1, %v2262_v16  ;;  %v580_v25 = vsel %vm564_vm5, 1, %v2262_v16  ;;  %v583_v27 = vsel %vm567_vm6, 1, %v2262_v16  ;;  %v582_v28 = vsel %vm566_vm7, 1, %v2262_v16  ;;  %v2161_v63 = vld [vmem:[#allocation7 + $0x58] sm:$0xff]   ;;  %p2239_p0 = pnand %p2238_p13, %p2232_p10 }
  0x25   :  { %vm694_vm8 = vcmp.eq.f32.partialorder %v2304_v7, 1.0  ;;  %vm693_vm9 = vcmp.eq.f32.partialorder %v2302_v6, 1.0  ;;  %vm696_vm10 = vcmp.eq.f32.partialorder %v2308_v11, 1.0  ;;  %vm695_vm11 = vcmp.eq.f32.partialorder %v2306_v10, 1.0  ;;  %2036 = vmatprep.subr.bf16.mxu1 %v2157_v47 }
  0x26   :  { %v710_v30 = vsel %vm694_vm8, 1, %v2262_v16  ;;  %v709_v31 = vsel %vm693_vm9, 1, %v2262_v16  ;;  %v712_v32 = vsel %vm696_vm10, 1, %v2262_v16  ;;  %v711_v33 = vsel %vm695_vm11, 1, %v2262_v16  ;;  %2037 = vmatpush3.bf16.msra.mxu1 %v2157_v47 }
  0x27   :  { %2009 = vmatpush3.bf16.msra.mxu0 %v2143_v3  ;;  %602 = vperm.xlu1 %2138, %v579_v19   ;;  %vm698_vm12 = vcmp.eq.f32.partialorder %v2312_v14, 1.0  ;;  %vm697_vm13 = vcmp.eq.f32.partialorder %v2310_v13, 1.0  ;;  %vm700_vm14 = vcmp.eq.f32.partialorder %v2324_v23, 1.0  ;;  %vm699_vm15 = vcmp.eq.f32.partialorder %v2322_v22, 1.0 }
  0x28   :  { %2010 = vmatprep.subr.bf16.mxu0 %v2144_v4  ;;  %596 = vperm.xlu0 %2137, %v577_v20   ;;  %v714_v34 = vsel %vm698_vm12, 1, %v2262_v16  ;;  %v713_v36 = vsel %vm697_vm13, 1, %v2262_v16  ;;  %v716_v37 = vsel %vm700_vm14, 1, %v2262_v16  ;;  %v715_v38 = vsel %vm699_vm15, 1, %v2262_v16 }
  0x29   :  { %vm827_vm0 = vcmp.eq.f32.partialorder %v2304_v7, 2.0  ;;  %vm826_vm1 = vcmp.eq.f32.partialorder %v2302_v6, 2.0  ;;  %vm829_vm2 = vcmp.eq.f32.partialorder %v2308_v11, 2.0  ;;  %vm828_vm3 = vcmp.eq.f32.partialorder %v2306_v10, 2.0  ;;  %2038 = vmatprep.subr.bf16.mxu1 %v2158_v52 }
  0x2a   :  { %v843_v40 = vsel %vm827_vm0, 1, %v2262_v16  ;;  %v842_v42 = vsel %vm826_vm1, 1, %v2262_v16  ;;  %v845_v43 = vsel %vm829_vm2, 1, %v2262_v16  ;;  %v844_v44 = vsel %vm828_vm3, 1, %v2262_v16  ;;  %2039 = vmatpush3.bf16.msra.mxu1 %v2158_v52 }
  0x2b   :  { %2011 = vmatpush3.bf16.msra.mxu0 %v2144_v4  ;;  %608 = vperm.xlu1 %2138, %v581_v24   ;;  %vm831_vm4 = vcmp.eq.f32.partialorder %v2312_v14, 2.0  ;;  %vm830_vm5 = vcmp.eq.f32.partialorder %v2310_v13, 2.0  ;;  %v2366_v48 = vunpack.c.h.bf16 %v64_v35  ;;  %vm833_vm6 = vcmp.eq.f32.partialorder %v2324_v23, 2.0  ;;  %v2162_v24 = vld [vmem:[#allocation7 + $0x50] sm:$0xff]  }
  0x2c   :  { %2012 = vmatprep.subr.bf16.mxu0 %v2145_v9  ;;  %605 = vperm.xlu0 %2137, %v580_v25   ;;  %v847_v46 = vsel %vm831_vm4, 1, %v2262_v16  ;;  %v846_v49 = vsel %vm830_vm5, 1, %v2262_v16  ;;  %v2370_v50 = vunpack.c.l.bf16 %v64_v35  ;;  %vm832_vm7 = vcmp.eq.f32.partialorder %v2322_v22, 2.0 }
  0x2d   :  { %v849_v51 = vsel %vm833_vm6, 1, %v2262_v16  ;;  %v2374_v53 = vunpack.c.h.bf16 %v66_v39  ;;  %v848_v54 = vsel %vm832_vm7, 1, %v2262_v16  ;;  %vm569_vm8 = vcmp.eq.f32.partialorder %v2366_v48, 0.0  ;;  %2040 = vmatprep.subr.bf16.mxu1 %v2159_v57 }
  0x2e   :  { %v2378_v55 = vunpack.c.l.bf16 %v66_v39  ;;  %vm568_vm9 = vcmp.eq.f32.partialorder %v2370_v50, 0.0  ;;  %v585_v56 = vsel %vm569_vm8, 1, %v2262_v16  ;;  %2041 = vmatpush3.bf16.msra.mxu1 %v2159_v57  ;;  %vm702_vm12 = vcmp.eq.f32.partialorder %v2366_v48, 1.0 }
  0x2f   :  { %2013 = vmatpush3.bf16.msra.mxu0 %v2145_v9  ;;  %614 = vperm.xlu1 %2138, %v583_v27   ;;  %v584_v58 = vsel %vm568_vm9, 1, %v2262_v16  ;;  %vm571_vm10 = vcmp.eq.f32.partialorder %v2374_v53, 0.0  ;;  %vm701_vm13 = vcmp.eq.f32.partialorder %v2370_v50, 1.0  ;;  %v718_v62 = vsel %vm702_vm12, 1, %v2262_v16  ;;  %v2163_v27 = vld [vmem:[#allocation7 + $0x48] sm:$0xff]  }
  0x30   :  { %2014 = vmatprep.subr.bf16.mxu0 %v2146_v21  ;;  %611 = vperm.xlu0 %2137, %v582_v28   ;;  %vm570_vm11 = vcmp.eq.f32.partialorder %v2378_v55, 0.0  ;;  %v587_v59 = vsel %vm571_vm10, 1, %v2262_v16  ;;  %v717_v0 = vsel %vm701_vm13, 1, %v2262_v16  ;;  %vm704_vm14 = vcmp.eq.f32.partialorder %v2374_v53, 1.0 }
  0x31   :  { %v586_v61 = vsel %vm570_vm11, 1, %v2262_v16  ;;  %2042 = vmatprep.subr.bf16.mxu1 %v2160_v60  ;;  %vm703_vm15 = vcmp.eq.f32.partialorder %v2378_v55, 1.0  ;;  %v720_v1 = vsel %vm704_vm14, 1, %v2262_v16  ;;  %vm960_vm0 = vcmp.eq.f32.partialorder %v2304_v7, 3.0 }
  0x32   :  { %2043 = vmatpush3.bf16.msra.mxu1 %v2160_v60  ;;  %v719_v2 = vsel %vm703_vm15, 1, %v2262_v16  ;;  %vm959_vm1 = vcmp.eq.f32.partialorder %v2302_v6, 3.0  ;;  %v976_v3 = vsel %vm960_vm0, 1, %v2262_v16  ;;  %vm962_vm2 = vcmp.eq.f32.partialorder %v2308_v11, 3.0 }
  0x33   :  { %2015 = vmatpush3.bf16.msra.mxu0 %v2146_v21  ;;  %729 = vperm.xlu1 %2138, %v710_v30   ;;  %v975_v4 = vsel %vm959_vm1, 1, %v2262_v16  ;;  %vm961_vm3 = vcmp.eq.f32.partialorder %v2306_v10, 3.0  ;;  %v978_v5 = vsel %vm962_vm2, 1, %v2262_v16  ;;  %vm964_vm4 = vcmp.eq.f32.partialorder %v2312_v14, 3.0  ;;  %v2164_v30 = vld [vmem:[#allocation7 + $0x40] sm:$0xff]  }
  0x34   :  { %2016 = vmatprep.subr.bf16.mxu0 %v2147_v26  ;;  %726 = vperm.xlu0 %2137, %v709_v31   ;;  %vm963_vm5 = vcmp.eq.f32.partialorder %v2310_v13, 3.0  ;;  %v980_v9 = vsel %vm964_vm4, 1, %v2262_v16  ;;  %vm966_vm6 = vcmp.eq.f32.partialorder %v2324_v23, 3.0  ;;  %vm965_vm7 = vcmp.eq.f32.partialorder %v2322_v22, 3.0 }
  0x35   :  { %2044 = vmatprep.subr.bf16.mxu1 %v2161_v63  ;;  %v981_v17 = vsel %vm965_vm7, 1, %v2262_v16  ;;  %vm835_vm8 = vcmp.eq.f32.partialorder %v2366_v48, 2.0  ;;  %vm834_vm9 = vcmp.eq.f32.partialorder %v2370_v50, 2.0  ;;  %vm837_vm10 = vcmp.eq.f32.partialorder %v2374_v53, 2.0 }
  0x36   :  { %2045 = vmatpush3.bf16.msra.mxu1 %v2161_v63  ;;  %v851_v18 = vsel %vm835_vm8, 1, %v2262_v16  ;;  %v850_v19 = vsel %vm834_vm9, 1, %v2262_v16  ;;  %vm836_vm11 = vcmp.eq.f32.partialorder %v2378_v55, 2.0  ;;  %v853_v20 = vsel %vm837_vm10, 1, %v2262_v16 }
  0x37   :  { %2017 = vmatpush3.bf16.msra.mxu0 %v2147_v26  ;;  %735 = vperm.xlu1 %2138, %v712_v32   ;;  %v852_v21 = vsel %vm836_vm11, 1, %v2262_v16  ;;  %vm1093_vm12 = vcmp.eq.f32.partialorder %v2304_v7, 4.0  ;;  %vm1092_vm13 = vcmp.eq.f32.partialorder %v2302_v6, 4.0  ;;  %vm1095_vm14 = vcmp.eq.f32.partialorder %v2308_v11, 4.0 }
  0x38   :  { %2018 = vmatprep.subr.bf16.mxu0 %v2148_v29  ;;  %732 = vperm.xlu0 %2137, %v711_v33   ;;  %v1109_v25 = vsel %vm1093_vm12, 1, %v2262_v16  ;;  %v1108_v26 = vsel %vm1092_vm13, 1, %v2262_v16  ;;  %vm1094_vm15 = vcmp.eq.f32.partialorder %v2306_v10, 4.0  ;;  %v1111_v28 = vsel %vm1095_vm14, 1, %v2262_v16 }
  0x39   :  { %2046 = vmatprep.subr.bf16.mxu1 %v2162_v24  ;;  %vm1097_vm0 = vcmp.eq.f32.partialorder %v2312_v14, 4.0  ;;  %vm1096_vm1 = vcmp.eq.f32.partialorder %v2310_v13, 4.0  ;;  %v2432_v32 = vunpack.c.h.bf16 %v2353_v41  ;;  %vm1099_vm2 = vcmp.eq.f32.partialorder %v2324_v23, 4.0 }
  0x3a   :  { %2047 = vmatpush3.bf16.msra.mxu1 %v2162_v24  ;;  %v1113_v31 = vsel %vm1097_vm0, 1, %v2262_v16  ;;  %v1112_v33 = vsel %vm1096_vm1, 1, %v2262_v16  ;;  %vm968_vm12 = vcmp.eq.f32.partialorder %v2366_v48, 3.0  ;;  %vm967_vm13 = vcmp.eq.f32.partialorder %v2370_v50, 3.0 }
  0x3b   :  { %2019 = vmatpush3.bf16.msra.mxu0 %v2148_v29  ;;  %741 = vperm.xlu1 %2138, %v714_v34   ;;  %v1110_v29 = vsel %vm1094_vm15, 1, %v2262_v16  ;;  %v2437_v34 = vunpack.c.l.bf16 %v2353_v41  ;;  %vm573_vm4 = vcmp.eq.f32.partialorder %v2432_v32, 0.0  ;;  %vm706_vm8 = vcmp.eq.f32.partialorder %v2432_v32, 1.0 }
  0x3c   :  { %738 = vperm.xlu0 %2137, %v713_v36   ;;  %2048 = vmatprep.subr.bf16.mxu1 %v2163_v27  ;;  %v2442_v36 = vunpack.c.h.bf16 %v2363_v45  ;;  %v984_v47 = vsel %vm968_vm12, 1, %v2262_v16  ;;  %vm970_vm14 = vcmp.eq.f32.partialorder %v2374_v53, 3.0  ;;  %vm969_vm15 = vcmp.eq.f32.partialorder %v2378_v55, 3.0 }
  0x3d   :  { %vm705_vm9 = vcmp.eq.f32.partialorder %v2437_v34, 1.0  ;;  %v985_v52 = vsel %vm969_vm15, 1, %v2262_v16  ;;  %vm1226_vm0 = vcmp.eq.f32.partialorder %v2304_v7, 5.0  ;;  %vm1225_vm1 = vcmp.eq.f32.partialorder %v2302_v6, 5.0 }
  0x3e   :  { %2021 = vmatmul.mubr.bf16.vlgmr.msra.gmra.mxu0 %v58_v8  ;;  %v977_v8 = vsel %vm961_vm3, 1, %v2262_v16  ;;  %2049 = vmatpush3.bf16.msra.mxu1 %v2163_v27  ;;  %vm1098_vm3 = vcmp.eq.f32.partialorder %v2322_v22, 4.0  ;;  %vm708_vm10 = vcmp.eq.f32.partialorder %v2442_v36, 1.0  ;;  %v1242_v57 = vsel %vm1226_vm0, 1, %v2262_v16 }
  0x3f   :  { %2024 = vmatprep.mubr.bf16.mxu0 %v60_v12  ;;  %747 = vperm.xlu1 %2138, %v716_v37   ;;  %v979_v12 = vsel %vm963_vm5, 1, %v2262_v16  ;;  %v1114_v37 = vsel %vm1098_vm3, 1, %v2262_v16  ;;  %vm572_vm5 = vcmp.eq.f32.partialorder %v2437_v34, 0.0  ;;  %vm1227_vm3 = vcmp.eq.f32.partialorder %v2306_v10, 5.0 }
  0x40   :  { %744 = vperm.xlu0 %2137, %v715_v38   ;;  %2050 = vmatprep.subr.bf16.mxu1 %v2164_v30  ;;  %v2447_v38 = vunpack.c.l.bf16 %v2363_v45  ;;  %vm1101_vm12 = vcmp.eq.f32.partialorder %v2366_v48, 4.0  ;;  %vm1102_vm15 = vcmp.eq.f32.partialorder %v2378_v55, 4.0  ;;  %vm1359_vm0 = vcmp.eq.f32.partialorder %v2304_v7, 6.0 }
  0x42   :  { %2051 = vmatpush3.bf16.msra.mxu1 %v2164_v30  ;;  %vm574_vm7 = vcmp.eq.f32.partialorder %v2447_v38, 0.0  ;;  %vm707_vm11 = vcmp.eq.f32.partialorder %v2447_v38, 1.0 }
  0x43   :  { %862 = vperm.xlu1 %2138, %v843_v40   ;;  %v588_v40 = vsel %vm572_vm5, 1, %v2262_v16  ;;  %vm1229_vm5 = vcmp.eq.f32.partialorder %v2310_v13, 5.0 }
  0x44   :  { %859 = vperm.xlu0 %2137, %v842_v42   ;;  %v590_v42 = vsel %vm574_vm7, 1, %v2262_v16  ;;  %vm1231_vm7 = vcmp.eq.f32.partialorder %v2322_v22, 5.0 }
  0x46   :  { %2025 = vmatmul.mubr.bf16.gmra.mxu0 %v62_v15  ;;  %v982_v15 = vsel %vm966_vm6, 1, %v2262_v16  ;;  %vm575_vm6 = vcmp.eq.f32.partialorder %v2442_v36, 0.0 }
  0x47   :  { %2028 = vmatprep.mubr.bf16.mxu0 %v64_v35  ;;  %868 = vperm.xlu1 %2138, %v845_v43   ;;  %v1115_v35 = vsel %vm1099_vm2, 1, %v2262_v16  ;;  %v722_v43 = vsel %vm706_vm8, 1, %v2262_v16  ;;  %vm1228_vm2 = vcmp.eq.f32.partialorder %v2308_v11, 5.0  ;;  %vm839_vm8 = vcmp.eq.f32.partialorder %v2432_v32, 2.0 }
  0x48   :  { %865 = vperm.xlu0 %2137, %v844_v44   ;;  %v721_v44 = vsel %vm705_vm9, 1, %v2262_v16  ;;  %vm838_vm9 = vcmp.eq.f32.partialorder %v2437_v34, 2.0 }
  0x4b   :  { %874 = vperm.xlu1 %2138, %v847_v46   ;;  %v723_v46 = vsel %vm707_vm11, 1, %v2262_v16  ;;  %vm840_vm11 = vcmp.eq.f32.partialorder %v2447_v38, 2.0 }
  0x4c   :  { %871 = vperm.xlu0 %2137, %v846_v49   ;;  %v983_v49 = vsel %vm967_vm13, 1, %v2262_v16  ;;  %vm1100_vm13 = vcmp.eq.f32.partialorder %v2370_v50, 4.0 }
  0x4d   :  { %v1116_v27 = vsel %vm1100_vm13, 1, %v2262_v16  ;;  %vm1233_vm13 = vcmp.eq.f32.partialorder %v2370_v50, 5.0 }
  0x4e   :  { %2029 = vmatmul.mubr.bf16.gmra.mxu0 %v66_v39  ;;  %v589_v39 = vsel %vm573_vm4, 1, %v2262_v16  ;;  %vm1230_vm4 = vcmp.eq.f32.partialorder %v2312_v14, 5.0 }
  0x4f   :  { %2032 = vmatprep.mubr.bf16.mxu0 %v2353_v41  ;;  %880 = vperm.xlu1 %2138, %v849_v51   ;;  %v591_v41 = vsel %vm575_vm6, 1, %v2262_v16  ;;  %v986_v51 = vsel %vm970_vm14, 1, %v2262_v16  ;;  %vm1232_vm6 = vcmp.eq.f32.partialorder %v2324_v23, 5.0  ;;  %vm1103_vm14 = vcmp.eq.f32.partialorder %v2374_v53, 4.0 }
  0x50   :  { %877 = vperm.xlu0 %2137, %v848_v54   ;;  %v1119_v30 = vsel %vm1103_vm14, 1, %v2262_v16  ;;  %vm1236_vm14 = vcmp.eq.f32.partialorder %v2374_v53, 5.0 }
  0x53   :  { %620 = vperm.xlu1 %2138, %v585_v56  }
  0x54   :  { %617 = vperm.xlu0 %2137, %v584_v58   ;;  %v1241_v58 = vsel %vm1225_vm1, 1, %v2262_v16  ;;  %vm1358_vm1 = vcmp.eq.f32.partialorder %v2302_v6, 6.0 }
  0x56   :  { %2033 = vmatmul.mubr.bf16.gmra.mxu0 %v2363_v45  ;;  %v724_v45 = vsel %vm708_vm10, 1, %v2262_v16  ;;  %vm841_vm10 = vcmp.eq.f32.partialorder %v2442_v36, 2.0 }
  0x57   :  { %626 = vperm.xlu1 %2138, %v587_v59  }
  0x58   :  { %623 = vperm.xlu0 %2137, %v586_v61   ;;  %v1244_v61 = vsel %vm1228_vm2, 1, %v2262_v16  ;;  %vm1361_vm2 = vcmp.eq.f32.partialorder %v2308_v11, 6.0 }
  0x5b   :  { %753 = vperm.xlu1 %2138, %v718_v62   ;;  %v1243_v62 = vsel %vm1227_vm3, 1, %v2262_v16  ;;  %vm1360_vm3 = vcmp.eq.f32.partialorder %v2306_v10, 6.0 }
  0x5c   :  { %750 = vperm.xlu0 %2137, %v717_v0  }
  0x5f   :  { %759 = vperm.xlu1 %2138, %v720_v1   ;;  %v1246_v1 = vsel %vm1230_vm4, 1, %v2262_v16  ;;  %vm1363_vm4 = vcmp.eq.f32.partialorder %v2312_v14, 6.0 }
  0x60   :  { %756 = vperm.xlu0 %2137, %v719_v2   ;;  %v1245_v2 = vsel %vm1229_vm5, 1, %v2262_v16  ;;  %vm1362_vm5 = vcmp.eq.f32.partialorder %v2310_v13, 6.0 }
  0x63   :  { %995 = vperm.xlu1 %2138, %v976_v3  }
  0x64   :  { %992 = vperm.xlu0 %2137, %v975_v4  }
  0x67   :  { %1001 = vperm.xlu1 %2138, %v978_v5   ;;  %v1248_v5 = vsel %vm1232_vm6, 1, %v2262_v16  ;;  %vm1365_vm6 = vcmp.eq.f32.partialorder %v2324_v23, 6.0 }
  0x68   :  { %998 = vperm.xlu0 %2137, %v977_v8   ;;  %v1247_v8 = vsel %vm1231_vm7, 1, %v2262_v16  ;;  %vm1364_vm7 = vcmp.eq.f32.partialorder %v2322_v22, 6.0 }
  0x6b   :  { %1007 = vperm.xlu1 %2138, %v980_v9  }
  0x6c   :  { %1004 = vperm.xlu0 %2137, %v979_v12  }
  0x6f   :  { %1013 = vperm.xlu1 %2138, %v982_v15   ;;  %v855_v15 = vsel %vm839_vm8, 1, %v2262_v16  ;;  %vm972_vm8 = vcmp.eq.f32.partialorder %v2432_v32, 3.0 }
  0x70   :  { %1010 = vperm.xlu0 %2137, %v981_v17   ;;  %v854_v17 = vsel %vm838_vm9, 1, %v2262_v16  ;;  %vm971_vm9 = vcmp.eq.f32.partialorder %v2437_v34, 3.0 }
  0x73   :  { %886 = vperm.xlu1 %2138, %v851_v18  }
  0x74   :  { %883 = vperm.xlu0 %2137, %v850_v19  }
  0x77   :  { %892 = vperm.xlu1 %2138, %v853_v20   ;;  %v857_v20 = vsel %vm841_vm10, 1, %v2262_v16  ;;  %vm974_vm10 = vcmp.eq.f32.partialorder %v2442_v36, 3.0 }
  0x78   :  { %889 = vperm.xlu0 %2137, %v852_v21   ;;  %v856_v21 = vsel %vm840_vm11, 1, %v2262_v16  ;;  %vm973_vm11 = vcmp.eq.f32.partialorder %v2447_v38, 3.0 }
  0x7b   :  { %1128 = vperm.xlu1 %2138, %v1109_v25  }
  0x7c   :  { %1125 = vperm.xlu0 %2137, %v1108_v26   ;;  %v1117_v26 = vsel %vm1101_vm12, 1, %v2262_v16  ;;  %vm1234_vm12 = vcmp.eq.f32.partialorder %v2366_v48, 5.0 }
  0x7f   :  { %1134 = vperm.xlu1 %2138, %v1111_v28  }
  0x80   :  { %1131 = vperm.xlu0 %2137, %v1110_v29  }
  0x83   :  { %1140 = vperm.xlu1 %2138, %v1113_v31   ;;  %v1118_v31 = vsel %vm1102_vm15, 1, %v2262_v16  ;;  %vm1235_vm15 = vcmp.eq.f32.partialorder %v2378_v55, 5.0 }
  0x84   :  { %1137 = vperm.xlu0 %2137, %v1112_v33  }
  0x87   :  { %1146 = vperm.xlu1 %2138, %v1115_v35  }
  0x88   :  { %1143 = vperm.xlu0 %2137, %v1114_v37   ;;  %v1375_v37 = vsel %vm1359_vm0, 1, %v2262_v16  ;;  %vm1492_vm0 = vcmp.eq.f32.partialorder %v2304_v7, 7.0 }
  0x8b   :  { %632 = vperm.xlu1 %2138, %v589_v39   ;;  %v1374_v39 = vsel %vm1358_vm1, 1, %v2262_v16  ;;  %vm1491_vm1 = vcmp.eq.f32.partialorder %v2302_v6, 7.0 }
  0x8c   :  { %629 = vperm.xlu0 %2137, %v588_v40  }
  0x8f   :  { %638 = vperm.xlu1 %2138, %v591_v41   ;;  %v1377_v41 = vsel %vm1361_vm2, 1, %v2262_v16  ;;  %vm1494_vm2 = vcmp.eq.f32.partialorder %v2308_v11, 7.0 }
  0x90   :  { %635 = vperm.xlu0 %2137, %v590_v42   ;;  %v1510_v7 = vsel %vm1494_vm2, 1, %v2262_v16  ;;  %vm1240_vm2 = vcmp.eq.f32.partialorder %v2442_v36, 5.0 }
  0x93   :  { %765 = vperm.xlu1 %2138, %v722_v43   ;;  %v1376_v43 = vsel %vm1360_vm3, 1, %v2262_v16  ;;  %vm1493_vm3 = vcmp.eq.f32.partialorder %v2306_v10, 7.0 }
  0x94   :  { %762 = vperm.xlu0 %2137, %v721_v44   ;;  %v1379_v44 = vsel %vm1363_vm4, 1, %v2262_v16  ;;  %v1509_v6 = vsel %vm1493_vm3, 1, %v2262_v16  ;;  %vm1496_vm4 = vcmp.eq.f32.partialorder %v2312_v14, 7.0  ;;  %vm1239_vm3 = vcmp.eq.f32.partialorder %v2447_v38, 5.0 }
  0x95   :  { %v1512_v11 = vsel %vm1496_vm4, 1, %v2262_v16  ;;  %vm1500_vm4 = vcmp.eq.f32.partialorder %v2366_v48, 7.0 }
  0x97   :  { %771 = vperm.xlu1 %2138, %v724_v45   ;;  %v1378_v45 = vsel %vm1362_vm5, 1, %v2262_v16  ;;  %vm1495_vm5 = vcmp.eq.f32.partialorder %v2310_v13, 7.0 }
  0x98   :  { %768 = vperm.xlu0 %2137, %v723_v46   ;;  %v1511_v10 = vsel %vm1495_vm5, 1, %v2262_v16  ;;  %vm1499_vm5 = vcmp.eq.f32.partialorder %v2370_v50, 7.0 }
  0x9b   :  { %1019 = vperm.xlu1 %2138, %v984_v47  }
  0x9c   :  { %1016 = vperm.xlu0 %2137, %v983_v49   ;;  %v1381_v49 = vsel %vm1365_vm6, 1, %v2262_v16  ;;  %vm1498_vm6 = vcmp.eq.f32.partialorder %v2324_v23, 7.0 }
  0x9d   :  { %v1514_v14 = vsel %vm1498_vm6, 1, %v2262_v16  ;;  %vm1502_vm6 = vcmp.eq.f32.partialorder %v2374_v53, 7.0 }
  0x9e   :  { %v2473_v54 = vpop.permute.xlu1 %599 }
  0x9f   :  { %v2475_v56 = vpop.permute.xlu0 %593  ;;  %1025 = vperm.xlu1 %2138, %v986_v51   ;;  %v1380_v51 = vsel %vm1364_vm7, 1, %v2262_v16  ;;  %vm1497_vm7 = vcmp.eq.f32.partialorder %v2322_v22, 7.0 }
  0xa0   :  { %1022 = vperm.xlu0 %2137, %v985_v52   ;;  %v1513_v13 = vsel %vm1497_vm7, 1, %v2262_v16  ;;  %vm1501_vm7 = vcmp.eq.f32.partialorder %v2378_v55, 7.0 }
  0xa2   :  { %v2481_v59 = vpop.permute.xlu1 %602 }
  0xa3   :  { %v2483_v60 = vpop.permute.xlu0 %596  ;;  %1261 = vperm.xlu1 %2138, %v1242_v57   ;;  %v988_v57 = vsel %vm972_vm8, 1, %v2262_v16  ;;  %vm1105_vm8 = vcmp.eq.f32.partialorder %v2432_v32, 4.0 }
  0xa4   :  { %1258 = vperm.xlu0 %2137, %v1241_v58   ;;  %v1121_v23 = vsel %vm1105_vm8, 1, %v2262_v16  ;;  %vm1371_vm8 = vcmp.eq.f32.partialorder %v2432_v32, 6.0 }
  0xa6   :  { %v2489_v63 = vpop.permute.xlu1 %608 }
  0xa7   :  { %v2491_v0 = vpop.permute.xlu0 %605  ;;  %1267 = vperm.xlu1 %2138, %v1244_v61   ;;  %v987_v61 = vsel %vm971_vm9, 1, %v2262_v16  ;;  %vm1104_vm9 = vcmp.eq.f32.partialorder %v2437_v34, 4.0 }
  0xa8   :  { %1264 = vperm.xlu0 %2137, %v1243_v62   ;;  %v990_v62 = vsel %vm974_vm10, 1, %v2262_v16  ;;  %v1120_v22 = vsel %vm1104_vm9, 1, %v2262_v16  ;;  %vm1107_vm10 = vcmp.eq.f32.partialorder %v2442_v36, 4.0  ;;  %vm1370_vm9 = vcmp.eq.f32.partialorder %v2437_v34, 6.0 }
  0xaa   :  { %v2497_v3 = vpop.permute.xlu1 %614 }
  0xab   :  { %v2499_v4 = vpop.permute.xlu0 %611  ;;  %1273 = vperm.xlu1 %2138, %v1246_v1   ;;  %v989_v1 = vsel %vm973_vm11, 1, %v2262_v16  ;;  %vm1106_vm11 = vcmp.eq.f32.partialorder %v2447_v38, 4.0 }
  0xac   :  { %1270 = vperm.xlu0 %2137, %v1245_v2  }
  0xae   :  { %v2505_v9 = vpop.permute.xlu1 %729 }
  0xaf   :  { %v2507_v12 = vpop.permute.xlu0 %726  ;;  %1279 = vperm.xlu1 %2138, %v1248_v5  }
  0xb0   :  { %1276 = vperm.xlu0 %2137, %v1247_v8   ;;  %v1250_v8 = vsel %vm1234_vm12, 1, %v2262_v16  ;;  %vm1367_vm12 = vcmp.eq.f32.partialorder %v2366_v48, 6.0  ;;  %v1515_v48 = vsel %vm1499_vm5, 1, %v2262_v16  ;;  %vm773_vm5 = vcmp.eq.s32.totalorder %v2507_v12, 1 }
  0xb2   :  { %v2513_v18 = vpop.permute.xlu1 %735 }
  0xb3   :  { %v2516_v19 = vpop.permute.xlu0 %732  ;;  %898 = vperm.xlu1 %2138, %v855_v15   ;;  %v1249_v15 = vsel %vm1233_vm13, 1, %v2262_v16  ;;  %vm1366_vm13 = vcmp.eq.f32.partialorder %v2370_v50, 6.0 }
  0xb4   :  { %895 = vperm.xlu0 %2137, %v854_v17  }
  0xb6   :  { %v2521_v24 = vpop.permute.xlu1 %741 }
  0xb7   :  { %v2524_v25 = vpop.permute.xlu0 %738  ;;  %904 = vperm.xlu1 %2138, %v857_v20   ;;  %v1252_v20 = vsel %vm1236_vm14, 1, %v2262_v16  ;;  %vm1369_vm14 = vcmp.eq.f32.partialorder %v2374_v53, 6.0 }
  0xb8   :  { %901 = vperm.xlu0 %2137, %v856_v21  }
  0xba   :  { %v2529_v28 = vpop.permute.xlu1 %747 }
  0xbb   :  { %v2532_v29 = vpop.permute.xlu0 %744  ;;  %1152 = vperm.xlu1 %2138, %v1117_v26   ;;  %v1251_v26 = vsel %vm1235_vm15, 1, %v2262_v16  ;;  %vm1368_vm15 = vcmp.eq.f32.partialorder %v2378_v55, 6.0  ;;  %v1517_v55 = vsel %vm1501_vm7, 1, %v2262_v16  ;;  %vm775_vm7 = vcmp.eq.s32.totalorder %v2516_v19, 1 }
  0xbc   :  { %1149 = vperm.xlu0 %2137, %v1116_v27   ;;  %v1508_v27 = vsel %vm1492_vm0, 1, %v2262_v16  ;;  %vm1238_vm0 = vcmp.eq.f32.partialorder %v2432_v32, 5.0 }
  0xbe   :  { %v2538_v33 = vpop.permute.xlu1 %862 }
  0xbf   :  { %v2540_v35 = vpop.permute.xlu0 %859  ;;  %1158 = vperm.xlu1 %2138, %v1119_v30   ;;  %v1507_v30 = vsel %vm1491_vm1, 1, %v2262_v16  ;;  %vm1237_vm1 = vcmp.eq.f32.partialorder %v2437_v34, 5.0 }
  0xc0   :  { %1155 = vperm.xlu0 %2137, %v1118_v31  }
  0xc2   :  { %v2549_v42 = vpop.permute.xlu1 %868 }
  0xc3   :  { %1394 = vperm.xlu1 %2138, %v1375_v37   ;;  %v2546_v40 = vpop.permute.xlu0 %865 }
  0xc4   :  { %1391 = vperm.xlu0 %2137, %v1374_v39  }
  0xc6   :  { %v2560_v47 = vpop.permute.xlu1 %874 }
  0xc7   :  { %1400 = vperm.xlu1 %2138, %v1377_v41   ;;  %v2557_v46 = vpop.permute.xlu0 %871 }
  0xc8   :  { %1397 = vperm.xlu0 %2137, %v1376_v43  }
  0xca   :  { %v2569_v58 = vpop.permute.xlu1 %880 }
  0xcb   :  { %1406 = vperm.xlu1 %2138, %v1379_v44   ;;  %v2566_v52 = vpop.permute.xlu0 %877 }
  0xcc   :  { %1403 = vperm.xlu0 %2137, %v1378_v45  }
  0xce   :  { %v2580_v5 = vpop.permute.xlu1 %620 }
  0xcf   :  { %1412 = vperm.xlu1 %2138, %v1381_v49   ;;  %v2577_v2 = vpop.permute.xlu0 %617  ;;  %v1123_v49 = vsel %vm1107_vm10, 1, %v2262_v16  ;;  %vm1373_vm10 = vcmp.eq.f32.partialorder %v2442_v36, 6.0 }
  0xd0   :  { %1409 = vperm.xlu0 %2137, %v1380_v51  }
  0xd2   :  { %v2589_v21 = vpop.permute.xlu1 %626 }
  0xd3   :  { %1031 = vperm.xlu1 %2138, %v988_v57   ;;  %v2586_v17 = vpop.permute.xlu0 %623  ;;  %v1122_v57 = vsel %vm1106_vm11, 1, %v2262_v16  ;;  %vm1372_vm11 = vcmp.eq.f32.partialorder %v2447_v38, 6.0 }
  0xd4   :  { %1028 = vperm.xlu0 %2137, %v987_v61  }
  0xd6   :  { %v2600_v37 = vpop.permute.xlu1 %753 }
  0xd7   :  { %1037 = vperm.xlu1 %2138, %v990_v62   ;;  %v2597_v31 = vpop.permute.xlu0 %750  ;;  %v1383_v62 = vsel %vm1367_vm12, 1, %v2262_v16  ;;  %vm1504_vm12 = vcmp.eq.f32.partialorder %v2432_v32, 7.0 }
  0xd8   :  { %1034 = vperm.xlu0 %2137, %v989_v1  }
  0xda   :  { %v2609_v41 = vpop.permute.xlu1 %759 }
  0xdb   :  { %1285 = vperm.xlu1 %2138, %v1250_v8   ;;  %v2606_v39 = vpop.permute.xlu0 %756  ;;  %v1382_v8 = vsel %vm1366_vm13, 1, %v2262_v16  ;;  %vm1503_vm13 = vcmp.eq.f32.partialorder %v2437_v34, 7.0 }
  0xdc   :  { %1282 = vperm.xlu0 %2137, %v1249_v15   ;;  %v2640_v15 = vld [vmem:[%s3654_s4] ss:$0 sm:$0xff] }
  0xde   :  { %v2620_v44 = vpop.permute.xlu1 %995 }
  0xdf   :  { %1291 = vperm.xlu1 %2138, %v1252_v20   ;;  %v2617_v43 = vpop.permute.xlu0 %992 }
  0xe0   :  { %1288 = vperm.xlu0 %2137, %v1251_v26  }
  0xe2   :  { %v2629_v51 = vpop.permute.xlu1 %1001 }
  0xe3   :  { %1527 = vperm.xlu1 %2138, %v1508_v27   ;;  %v2626_v45 = vpop.permute.xlu0 %998 }
  0xe4   :  { %1524 = vperm.xlu0 %2137, %v1507_v30  }
  0xe6   :  { %v2645_v27 = vpop.permute.xlu1 %1007 }
  0xe7   :  { %1533 = vperm.xlu1 %2138, %v1510_v7   ;;  %v2642_v20 = vpop.permute.xlu0 %1004  ;;  %3733 = vst [vmem:[#allocation14_spill] sm:$0xff] %v2645_v27  ;;  %v1255_v27 = vsel %vm1239_vm3, 1, %v2262_v16  ;;  %vm640_vm3 = vcmp.eq.s32.totalorder %v2475_v56, 1 }
  0xe8   :  { %1530 = vperm.xlu0 %2137, %v1509_v6   ;;  %3732 = vst [vmem:[#allocation13_spill] sm:$0xff] %v2642_v20  ;;  %v1385_v6 = vsel %vm1369_vm14, 1, %v2262_v16  ;;  %v1253_v20 = vsel %vm1237_vm1, 1, %v2262_v16  ;;  %vm1506_vm14 = vcmp.eq.f32.partialorder %v2442_v36, 7.0  ;;  %vm3705_vm1 = vmmov 0  }
  0xeb   :  { %1539 = vperm.xlu1 %2138, %v1512_v11  }
  0xec   :  { %1536 = vperm.xlu0 %2137, %v1511_v10  }
  0xef   :  { %1545 = vperm.xlu1 %2138, %v1514_v14   ;;  %v1384_v14 = vsel %vm1368_vm15, 1, %v2262_v16  ;;  %vm1505_vm15 = vcmp.eq.f32.partialorder %v2447_v38, 7.0 }
  0xf0   :  { %1542 = vperm.xlu0 %2137, %v1513_v13  }
  0xf3   :  { %1164 = vperm.xlu1 %2138, %v1121_v23  }
  0xf4   :  { %1161 = vperm.xlu0 %2137, %v1120_v22  }
  0xf7   :  { %1170 = vperm.xlu1 %2138, %v1123_v49  }
  0xf8   :  { %1167 = vperm.xlu0 %2137, %v1122_v57  }
  0xfb   :  { %1418 = vperm.xlu1 %2138, %v1383_v62   ;;  %v2655_v62 = vpop.permute.xlu0 %1010 }
  0xfc   :  { %1415 = vperm.xlu0 %2137, %v1382_v8  }
  0xfe   :  { %v2022_v61 = vpop.f32.mrf.mxu0 }
  0xff   :  { %v249_v11 = vadd.f32 %v2022_v61, %v2640_v15  ;;  %1424 = vperm.xlu1 %2138, %v1385_v6  }
 0x100   :  { %v240_v1 = vpop.f32.mrf.mxu0  ;;  %1421 = vperm.xlu0 %2137, %v1384_v14  }
 0x101   :  { %v241_v30 = vadd.f32 %v2640_v15, %v240_v1  ;;  %v1254_v1 = vsel %vm1238_vm0, 1, %v2262_v16  ;;  %v305_v61 = vmax.f32 %v249_v11, 0.0  ;;  %v1256_v11 = vsel %vm1240_vm2, 1, %v2262_v16 }
 0x102   :  { %v2023_v26 = vpop.f32.mrf.mxu0  ;;  %vm642_vm2 = vcmp.eq.s32.totalorder %v2473_v54, 1 }
 0x103   :  { %v252_v7 = vadd.f32 %v2023_v26, %v2640_v15  ;;  %v303_v49 = vmax.f32 %v241_v30, 0.0  ;;  %v2658_v26 = vpop.permute.xlu1 %1013  ;;  %1297 = vperm.xlu1 %2138, %v1254_v1  }
 0x104   :  { %v243_v10 = vpop.f32.mrf.mxu0  ;;  %3734 = vst [vmem:[#allocation15_spill] sm:$0xff] %v2658_v26  ;;  %1294 = vperm.xlu0 %2137, %v1253_v20  }
 0x105   :  { %v244_v13 = vadd.f32 %v2640_v15, %v243_v10  ;;  %v306_v23 = vmax.f32 %v252_v7, 0.0 }
 0x106   :  { %v2026_v22 = vpop.f32.mrf.mxu0 }
 0x107   :  { %v304_v57 = vmax.f32 %v244_v13, 0.0  ;;  %v320_v7 = vpack.c.bf16 %v306_v23, %v305_v61  ;;  %v265_v13 = vadd.f32 %v2026_v22, %v2640_v15  ;;  %v2673_v61 = vpop.permute.xlu1 %886  ;;  %1303 = vperm.xlu1 %2138, %v1256_v11   ;;  %v1516_v22 = vsel %vm1500_vm4, 1, %v2262_v16 }
 0x108   :  { %v256_v8 = vpop.f32.mrf.mxu0  ;;  %3735 = vst [vmem:[#allocation16_spill] sm:$0xff] %v2673_v61  ;;  %1300 = vperm.xlu0 %2137, %v1255_v27   ;;  %v1518_v11 = vsel %vm1502_vm6, 1, %v2262_v16  ;;  %vm644_vm4 = vcmp.eq.s32.totalorder %v2491_v0, 1 }
 0x109   :  { %v319_v10 = vpack.c.bf16 %v304_v57, %v303_v49  ;;  %v257_v30 = vadd.f32 %v2640_v15, %v256_v8  ;;  %v2670_v49 = vpop.permute.xlu0 %883 }
 0x10a   :  { %v2027_v6 = vpop.f32.mrf.mxu0 }
 0x10b   :  { %v268_v14 = vadd.f32 %v2027_v6, %v2640_v15  ;;  %2052 = vmatprep.mubr.bf16.mxu1 %v319_v10  ;;  %v307_v20 = vmax.f32 %v257_v30, 0.0  ;;  %v309_v10 = vmax.f32 %v265_v13, 0.0  ;;  %1551 = vperm.xlu1 %2138, %v1516_v22   ;;  %v2685_v53 = vpop.permute.xlu1 %892 }
 0x10c   :  { %v259_v26 = vpop.f32.mrf.mxu0  ;;  %2053 = vmatmul.mubr.bf16.vlgmr.msra.gmra.mxu1 %v320_v7  ;;  %1548 = vperm.xlu0 %2137, %v1515_v48  }
 0x10d   :  { %v260_v23 = vadd.f32 %v2640_v15, %v259_v26  ;;  %v310_v57 = vmax.f32 %v268_v14, 0.0  ;;  %v2681_v27 = vpop.permute.xlu0 %889 }
 0x10e   :  { %v2030_v1 = vpop.f32.mrf.mxu0 }
 0x10f   :  { %v308_v8 = vmax.f32 %v260_v23, 0.0  ;;  %v322_v50 = vpack.c.bf16 %v310_v57, %v309_v10  ;;  %v281_v13 = vadd.f32 %v2030_v1, %v2640_v15  ;;  %1557 = vperm.xlu1 %2138, %v1518_v11   ;;  %v1387_v1 = vsel %vm1371_vm8, 1, %v2262_v16  ;;  %v2697_v61 = vpop.permute.xlu1 %1128 }
 0x110   :  { %v272_v7 = vpop.f32.mrf.mxu0  ;;  %1554 = vperm.xlu0 %2137, %v1517_v55   ;;  %vm906_vm8 = vcmp.eq.s32.totalorder %v2540_v35, 1 }
 0x111   :  { %v321_v26 = vpack.c.bf16 %v308_v8, %v307_v20  ;;  %v273_v14 = vadd.f32 %v2640_v15, %v272_v7  ;;  %v313_v7 = vmax.f32 %v281_v13, 0.0  ;;  %v1389_v13 = vsel %vm1373_vm10, 1, %v2262_v16 }
 0x112   :  { %v2031_v6 = vpop.f32.mrf.mxu0  ;;  %vm908_vm10 = vcmp.eq.s32.totalorder %v2546_v40, 1 }
 0x113   :  { %v284_v30 = vadd.f32 %v2031_v6, %v2640_v15  ;;  %2056 = vmatprep.mubr.bf16.mxu1 %v321_v26  ;;  %v311_v22 = vmax.f32 %v273_v14, 0.0  ;;  %v1386_v26 = vsel %vm1370_vm9, 1, %v2262_v16  ;;  %v2694_v6 = vpop.permute.xlu0 %1125  ;;  %1430 = vperm.xlu1 %2138, %v1387_v1  }
 0x114   :  { %v275_v23 = vpop.f32.mrf.mxu0  ;;  %2057 = vmatmul.mubr.bf16.gmra.mxu1 %v322_v50  ;;  %1427 = vperm.xlu0 %2137, %v1386_v26   ;;  %v1520_v26 = vsel %vm1504_vm12, 1, %v2262_v16 }
 0x115   :  { %v276_v57 = vadd.f32 %v2640_v15, %v275_v23  ;;  %v314_v20 = vmax.f32 %v284_v30, 0.0 }
 0x116   :  { %v2034_v8 = vpop.f32.mrf.mxu0 }
 0x117   :  { %v312_v10 = vmax.f32 %v276_v57, 0.0  ;;  %v324_v23 = vpack.c.bf16 %v314_v20, %v313_v7  ;;  %v297_v55 = vadd.f32 %v2034_v8, %v2640_v15  ;;  %1436 = vperm.xlu1 %2138, %v1389_v13  }
 0x118   :  { %v288_v48 = vpop.f32.mrf.mxu0 }
 0x119   :  { %v323_v50 = vpack.c.bf16 %v312_v10, %v311_v22  ;;  %v289_v14 = vadd.f32 %v2640_v15, %v288_v48  ;;  %v1388_v22 = vsel %vm1372_vm11, 1, %v2262_v16  ;;  %v2707_v48 = vpop.permute.xlu0 %1131  ;;  %v317_v8 = vmax.f32 %v297_v55, 0.0 }
 0x11a   :  { %v2035_v30 = vpop.f32.mrf.mxu0  ;;  %1433 = vperm.xlu0 %2137, %v1388_v22   ;;  %vm1174_vm12 = vcmp.eq.s32.totalorder %v2707_v48, 1  ;;  %vm777_vm11 = vcmp.eq.s32.totalorder %v2524_v25, 1 }
 0x11b   :  { %v300_v11 = vadd.f32 %v2035_v30, %v2640_v15  ;;  %2060 = vmatprep.mubr.bf16.mxu1 %v323_v50  ;;  %v315_v1 = vmax.f32 %v289_v14, 0.0  ;;  %v2710_v50 = vpop.permute.xlu1 %1134  ;;  %1563 = vperm.xlu1 %2138, %v1520_v26   ;;  %v1522_v30 = vsel %vm1506_vm14, 1, %v2262_v16  ;;  %v1521_v14 = vsel %vm1505_vm15, 1, %v2262_v16 }
 0x11c   :  { %v291_v57 = vpop.f32.mrf.mxu0  ;;  %2061 = vmatmul.mubr.bf16.gmra.mxu1 %v324_v23  ;;  %v1519_v23 = vsel %vm1503_vm13, 1, %v2262_v16  ;;  %vm1041_vm15 = vcmp.eq.s32.totalorder %v2626_v45, 1  ;;  %vm646_vm14 = vcmp.eq.s32.totalorder %v2499_v4, 1  ;;  %vm1045_vm13 = vcmp.eq.s32.totalorder %v2655_v62, 1 }
 0x11d   :  { %v292_v20 = vadd.f32 %v2640_v15, %v291_v57  ;;  %v318_v10 = vmax.f32 %v300_v11, 0.0  ;;  %v1644_v15 = vld [vmem:[%s3652_s2] sm:$0xff]  ;;  %v2720_v11 = vpop.permute.xlu0 %1137 }
 0x11e   :  { %1560 = vperm.xlu0 %2137, %v1519_v23   ;;  %3736 = vst [vmem:[#allocation17_spill] sm:$0xff] %v2720_v11  ;;  %vm1654_vm0 = vcmp.gt.f32.partialorder %v1644_v15, 0.0  ;;  %v1646_v38 = vmax.f32 %v1644_v15, 1.0 }
 0x11f   :  { %v316_v7 = vmax.f32 %v292_v20, 0.0  ;;  %v326_v34 = vpack.c.bf16 %v318_v10, %v317_v8  ;;  %v2722_v36 = vpop.permute.xlu1 %1140  ;;  %1569 = vperm.xlu1 %2138, %v1522_v30   ;;  %v1656_v13 = vsel %vm1654_vm0, 1, %v2262_v16 }
 0x120   :  { %3737 = vst [vmem:[#allocation18_spill] sm:$0xff] %v2722_v36 }
 0x121   :  { %v325_v32 = vpack.c.bf16 %v316_v7, %v315_v1  ;;  %v2726_v55 = vpop.permute.xlu0 %1143 }
 0x122   :  { %1566 = vperm.xlu0 %2137, %v1521_v14   ;;  %3738 = vst [vmem:[#allocation19_spill] sm:$0xff] %v2726_v55 }
 0x123   :  { %2064 = vmatprep.mubr.bf16.mxu1 %v325_v32  ;;  %2140 = vset.pattern.permute.xlu1 %v2262_v16  ;;  %v2729_v57 = vpop.permute.xlu1 %1146 }
 0x124   :  { %2065 = vmatmul.mubr.bf16.gmra.mxu1 %v326_v34  ;;  %1658 = vperm.xlu1 %2140, %v1656_v13   ;;  %3739 = vst [vmem:[#allocation20_spill] sm:$0xff] %v2729_v57 }
 0x125   :  { %v2731_v22 = vpop.permute.xlu0 %629 }
 0x126   :  { %2139 = vset.pattern.permute.xlu0 %v2262_v16 }
 0x127   :  { %1649 = vperm.xlu0 %2139, %v1646_v38   ;;  %v2733_v20 = vpop.permute.xlu1 %632 }
 0x128   :  { %3740 = vst [vmem:[#allocation21_spill] sm:$0xff] %v2733_v20 }
 0x129   :  { %v2735_v10 = vpop.permute.xlu0 %635 }
 0x12b   :  { %v2737_v1 = vpop.permute.xlu1 %638 }
 0x12c   :  { %3741 = vst [vmem:[#allocation22_spill] sm:$0xff] %v2737_v1 }
 0x12d   :  { %v2739_v7 = vpop.permute.xlu0 %762 }
 0x12f   :  { %v2741_v26 = vpop.permute.xlu1 %765 }
 0x130   :  { %3742 = vst [vmem:[#allocation23_spill] sm:$0xff] %v2741_v26 }
 0x131   :  { %v2743_v8 = vpop.permute.xlu0 %768 }
 0x133   :  { %v2745_v23 = vpop.permute.xlu1 %771 }
 0x134   :  { %3743 = vst [vmem:[#allocation24_spill] sm:$0xff] %v2745_v23 }
 0x135   :  { %v2747_v16 = vpop.permute.xlu0 %1016 }
 0x136   :  { %3744 = vst [vmem:[#allocation25_spill] sm:$0xff] %v2747_v16 }
 0x137   :  { %v2749_v32 = vpop.permute.xlu1 %1019 }
 0x138   :  { %3745 = vst [vmem:[#allocation26_spill] sm:$0xff] %v2749_v32 }
 0x139   :  { %v2751_v34 = vpop.permute.xlu0 %1022 }
 0x13a   :  { %3746 = vst [vmem:[#allocation27_spill] sm:$0xff] %v2751_v34 }
 0x13b   :  { %v2753_v15 = vpop.permute.xlu1 %1025 }
 0x13c   :  { %3747 = vst [vmem:[#allocation28_spill] sm:$0xff] %v2753_v15  ;;  %v3677_v15 = vmov 0.0  }
 0x13d   :  { %v2755_v30 = vpop.permute.xlu0 %1258  ;;  %2068 = vmatprep.subr.bf16.mxu0 %v3677_v15  ;;  %2088 = vmatprep.subr.bf16.mxu1 %v3677_v15 }
 0x13f   :  { %v2757_v14 = vpop.permute.xlu1 %1261 }
 0x140   :  { %vm1306_vm0 = vcmp.eq.s32.totalorder %v2757_v14, 1 }
 0x141   :  { %v2759_v38 = vpop.permute.xlu0 %1264 }
 0x142   :  { %vm1307_vm6 = vcmp.eq.s32.totalorder %v2759_v38, 1 }
 0x143   :  { %v2761_v13 = vpop.permute.xlu1 %1267 }
 0x144   :  { %vm1308_vm9 = vcmp.eq.s32.totalorder %v2761_v13, 1 }
 0x145   :  { %v2763_v55 = vpop.permute.xlu0 %1270 }
 0x146   :  { %3748 = vst [vmem:[#allocation29_spill] sm:$0xff] %v2763_v55 }
 0x147   :  { %v2765_v57 = vpop.permute.xlu1 %1273 }
 0x148   :  { %3749 = vst [vmem:[#allocation30_spill] sm:$0xff] %v2765_v57 }
 0x149   :  { %v2767_v36 = vpop.permute.xlu0 %1276 }
 0x14a   :  { %3750 = vst [vmem:[#allocation31_spill] sm:$0xff] %v2767_v36 }
 0x14b   :  { %v2769_v11 = vpop.permute.xlu1 %1279 }
 0x14c   :  { %3751 = vst [vmem:[#allocation32_spill] sm:$0xff] %v2769_v11 }
 0x14d   :  { %v2771_v16 = vpop.permute.xlu0 %895 }
 0x14e   :  { %3752 = vst [vmem:[#allocation33_spill] sm:$0xff] %v2771_v16 }
 0x14f   :  { %v2773_v34 = vpop.permute.xlu1 %898 }
 0x150   :  { %3753 = vst [vmem:[#allocation34_spill] sm:$0xff] %v2773_v34 }
 0x151   :  { %v2777_v32 = vpop.permute.xlu0 %901 }
 0x153   :  { %v2779_v26 = vpop.permute.xlu1 %904 }
 0x154   :  { %3754 = vst [vmem:[#allocation35_spill] sm:$0xff] %v2779_v26 }
 0x155   :  { %v2781_v55 = vpop.permute.xlu0 %1149 }
 0x156   :  { %3755 = vst [vmem:[#allocation36_spill] sm:$0xff] %v2781_v55 }
 0x157   :  { %v2783_v57 = vpop.permute.xlu1 %1152 }
 0x158   :  { %3756 = vst [vmem:[#allocation37_spill] sm:$0xff] %v2783_v57 }
 0x159   :  { %v2785_v36 = vpop.permute.xlu0 %1155 }
 0x15a   :  { %3757 = vst [vmem:[#allocation38_spill] sm:$0xff] %v2785_v36 }
 0x15b   :  { %v2787_v11 = vpop.permute.xlu1 %1158 }
 0x15c   :  { %3758 = vst [vmem:[#allocation39_spill] sm:$0xff] %v2787_v11 }
 0x15d   :  { %v2789_v20 = vpop.permute.xlu0 %1391 }
 0x15e   :  { %3759 = vst [vmem:[#allocation40_spill] sm:$0xff] %v2789_v20 }
 0x15f   :  { %v2791_v34 = vpop.permute.xlu1 %1394 }
 0x160   :  { %3760 = vst [vmem:[#allocation41_spill] sm:$0xff] %v2791_v34 }
 0x161   :  { %v2793_v23 = vpop.permute.xlu0 %1397 }
 0x162   :  { %3761 = vst [vmem:[#allocation42_spill] sm:$0xff] %v2793_v23 }
 0x163   :  { %v2795_v1 = vpop.permute.xlu1 %1400 }
 0x164   :  { %3762 = vst [vmem:[#allocation43_spill] sm:$0xff] %v2795_v1 }
 0x165   :  { %v2797_v15 = vpop.permute.xlu0 %1403 }
 0x166   :  { %3763 = vst [vmem:[#allocation44_spill] sm:$0xff] %v2797_v15 }
 0x167   :  { %v2799_v16 = vpop.permute.xlu1 %1406 }
 0x168   :  { %3764 = vst [vmem:[#allocation45_spill] sm:$0xff] %v2799_v16  ;;  %v2165_v16 = vld [vmem:[#allocation7 + $0xb8] sm:$0xff]  }
 0x169   :  { %v2801_v26 = vpop.permute.xlu0 %1409  ;;  %2089 = vmatpush3.bf16.msra.mxu1 %v2165_v16  ;;  %v2169_v16 = vld [vmem:[#allocation7 + $0x98] sm:$0xff]  }
 0x16a   :  { %3765 = vst [vmem:[#allocation46_spill] sm:$0xff] %v2801_v26 }
 0x16b   :  { %v2803_v55 = vpop.permute.xlu1 %1412 }
 0x16c   :  { %3766 = vst [vmem:[#allocation47_spill] sm:$0xff] %v2803_v55  ;;  %v3775_v55 = vmov 0.0  }
 0x16d   :  { %v2805_v57 = vpop.permute.xlu0 %1028  ;;  %2084 = vmatprep.mubr.msk.bf16.mxu0 %vm3705_vm1, %v3775_v55  ;;  %2104 = vmatprep.mubr.msk.bf16.mxu1 %vm3705_vm1, %v3775_v55  ;;  %vm1305_vm1 = vcmp.eq.s32.totalorder %v2755_v30, 1 }
 0x16e   :  { %2090 = vmatprep.subr.bf16.mxu1 %v3775_v55 }
 0x16f   :  { %v2807_v36 = vpop.permute.xlu1 %1031 }
 0x170   :  { %3767 = vst [vmem:[#allocation48_spill] sm:$0xff] %v2807_v36 }
 0x171   :  { %v2809_v11 = vpop.permute.xlu0 %1034 }
 0x172   :  { %3768 = vst [vmem:[#allocation49_spill] sm:$0xff] %v2809_v11 }
 0x173   :  { %v2811_v20 = vpop.permute.xlu1 %1037 }
 0x174   :  { %3769 = vst [vmem:[#allocation50_spill] sm:$0xff] %v2811_v20 }
 0x175   :  { %v2813_v34 = vpop.permute.xlu0 %1282 }
 0x176   :  { %3770 = vst [vmem:[#allocation51_spill] sm:$0xff] %v2813_v34  ;;  %v2166_v34 = vld [vmem:[#allocation7 + $0xb0] sm:$0xff]  }
 0x177   :  { %v2815_v23 = vpop.permute.xlu1 %1285  ;;  %2091 = vmatpush3.bf16.msra.mxu1 %v2166_v34  ;;  %v2170_v34 = vld [vmem:[#allocation7 + $0x90] sm:$0xff]  }
 0x178   :  { %3771 = vst [vmem:[#allocation52_spill] sm:$0xff] %v2815_v23  ;;  %2092 = vmatprep.subr.bf16.mxu1 %v3775_v55 }
 0x179   :  { %v2817_v1 = vpop.permute.xlu0 %1288 }
 0x17a   :  { %3772 = vst [vmem:[#allocation53_spill] sm:$0xff] %v2817_v1  ;;  %v2167_v1 = vld [vmem:[#allocation7 + $0xa8] sm:$0xff]  }
 0x17b   :  { %v2819_v15 = vpop.permute.xlu1 %1291  ;;  %2093 = vmatpush3.bf16.msra.mxu1 %v2167_v1  ;;  %v2849_v1 = vld [vmem:[%s3654_s4 + $0x1] ss:$0 sm:$0xff] }
 0x17c   :  { %3773 = vst [vmem:[#allocation54_spill] sm:$0xff] %v2819_v15  ;;  %v2168_v15 = vld [vmem:[#allocation7 + $0xa0] sm:$0xff]   ;;  %2094 = vmatprep.subr.bf16.mxu1 %v3775_v55 }
 0x17d   :  { %v2821_v26 = vpop.permute.xlu0 %1524 }
 0x17e   :  { %3774 = vst [vmem:[#allocation55_spill] sm:$0xff] %v2821_v26 }
 0x17f   :  { %v2827_v11 = vpop.permute.xlu1 %1527  ;;  %2095 = vmatpush3.bf16.msra.mxu1 %v2168_v15 }
 0x180   :  { %3776 = vst [vmem:[#allocation56_spill] sm:$0xff] %v2827_v11  ;;  %2096 = vmatprep.subr.bf16.mxu1 %v3775_v55 }
 0x181   :  { %v2830_v23 = vpop.permute.xlu0 %1530 }
 0x182   :  { %3777 = vst [vmem:[#allocation57_spill] sm:$0xff] %v2830_v23 }
 0x183   :  { %v2833_v26 = vpop.permute.xlu1 %1533  ;;  %2097 = vmatpush3.bf16.msra.mxu1 %v2169_v16 }
 0x184   :  { %3778 = vst [vmem:[#allocation58_spill] sm:$0xff] %v2833_v26  ;;  %2098 = vmatprep.subr.bf16.mxu1 %v3775_v55 }
 0x185   :  { %v2836_v20 = vpop.permute.xlu0 %1536 }
 0x186   :  { %3779 = vst [vmem:[#allocation59_spill] sm:$0xff] %v2836_v20 }
 0x187   :  { %v2838_v36 = vpop.permute.xlu1 %1539  ;;  %2099 = vmatpush3.bf16.msra.mxu1 %v2170_v34 }
 0x188   :  { %3780 = vst [vmem:[#allocation60_spill] sm:$0xff] %v2838_v36  ;;  %2100 = vmatprep.subr.bf16.mxu1 %v3775_v55 }
 0x189   :  { %v2841_v11 = vpop.permute.xlu0 %1542 }
 0x18a   :  { %3781 = vst [vmem:[#allocation61_spill] sm:$0xff] %v2841_v11 }
 0x18b   :  { %v2844_v23 = vpop.permute.xlu1 %1545 }
 0x18c   :  { %3782 = vst [vmem:[#allocation62_spill] sm:$0xff] %v2844_v23 }
 0x18d   :  { %v2861_v16 = vpop.permute.xlu0 %1161 }
 0x18e   :  { %3783 = vst [vmem:[#allocation63_spill] sm:$0xff] %v2861_v16 }
 0x18f   :  { %v2870_v11 = vpop.permute.xlu1 %1164 }
 0x190   :  { %3784 = vst [vmem:[#allocation64_spill] sm:$0xff] %v2870_v11 }
 0x191   :  { %v2922_v16 = vpop.permute.xlu0 %1167 }
 0x1cc   :  { %v2054_v15 = vpop.f32.mrf.mxu1 }
 0x1cd   :  { %v422_v34 = vadd.f32 %v2054_v15, %v2849_v1 }
 0x1ce   :  { %v413_v23 = vpop.f32.mrf.mxu1 }
 0x1cf   :  { %v2877_v15 = vmax.f32 %v422_v34, 0.0  ;;  %v414_v20 = vadd.f32 %v2849_v1, %v413_v23 }
 0x1d0   :  { %v2055_v36 = vpop.f32.mrf.mxu1 }
 0x1d1   :  { %3785 = vst [vmem:[#allocation65_spill] sm:$0xff] %v2877_v15  ;;  %v2888_v34 = vmax.f32 %v414_v20, 0.0  ;;  %v425_v23 = vadd.f32 %v2055_v36, %v2849_v1  ;;  %v2894_v26 = vsel %vm642_vm2, %v2877_v15, -inf  ;;  %v2899_v11 = vsel %vm775_vm7, %v2877_v15, -inf }
 0x1d2   :  { %v416_v38 = vpop.f32.mrf.mxu1  ;;  %v2906_v20 = vsel %vm908_vm10, %v2877_v15, -inf  ;;  %v2911_v54 = vsel %vm1041_vm15, %v2877_v15, -inf  ;;  %v2916_v19 = vsel %vm1174_vm12, %v2877_v15, -inf  ;;  %v2919_v36 = vsel %vm1307_vm6, %v2877_v15, -inf  ;;  %v2938_v15 = vpop.permute.xlu1 %1170 }
 0x1d3   :  { %3786 = vst [vmem:[#allocation66_spill] sm:$0xff] %v2888_v34  ;;  %3787 = vst [vmem:[#allocation67_spill] sm:$0xff] %v2911_v54  ;;  %vm910_vm2 = vcmp.eq.s32.totalorder %v2557_v46, 1  ;;  %v2924_v40 = vmax.f32 %v425_v23, 0.0  ;;  %v417_v55 = vadd.f32 %v2849_v1, %v416_v38  ;;  %v2930_v45 = vsel %vm640_vm3, %v2888_v34, -inf }
 0x1d4   :  { %3788 = vst [vmem:[#allocation68_spill] sm:$0xff] %v2916_v19  ;;  %3789 = vst [vmem:[#allocation69_spill] sm:$0xff] %v2919_v36  ;;  %v2935_v48 = vsel %vm773_vm5, %v2888_v34, -inf  ;;  %vm647_vm6 = vcmp.eq.s32.totalorder %v2497_v3, 1  ;;  %v2058_v36 = vpop.f32.mrf.mxu1  ;;  %v2943_v23 = vsel %vm906_vm8, %v2888_v34, -inf  ;;  %vm3791_vm7 = vcmp.eq.s32.totalorder %v2617_v43, 1 }
 0x1d5   :  { %3790 = vst [vmem:[#allocation70_spill] sm:$0xff] %v2924_v40  ;;  %v2948_v56 = vsel %vm3791_vm7, %v2888_v34, -inf  ;;  %vm3792_vm3 = vcmp.eq.s32.totalorder %v2694_v6, 1  ;;  %v2958_v38 = vsel %vm1305_vm1, %v2888_v34, -inf  ;;  %vm780_vm5 = vcmp.eq.s32.totalorder %v2529_v28, 1  ;;  %v3816_v3 = vld [vmem:[#allocation16_spill] sm:$0xff] }
 0x1d6   :  { %v2953_v12 = vsel %vm3792_vm3, %v2888_v34, -inf  ;;  %3794 = vst [vmem:[#allocation72_spill] sm:$0xff] %v2958_v38  ;;  %vm913_vm8 = vcmp.eq.s32.totalorder %v2569_v58, 1  ;;  %v2962_v35 = vmax.f32 %v417_v55, 0.0  ;;  %v438_v43 = vadd.f32 %v2058_v36, %v2849_v1  ;;  %v429_v30 = vpop.f32.mrf.mxu1  ;;  %v3047_v14 = vpop.permute.xlu1 %1418 }
 0x1d7   :  { %3793 = vst [vmem:[#allocation71_spill] sm:$0xff] %v2953_v12  ;;  %vm3796_vm10 = vcmp.eq.s32.totalorder %v2481_v59, 1  ;;  %vm3797_vm12 = vcmp.eq.s32.totalorder %v2513_v18, 1  ;;  %vm645_vm1 = vcmp.eq.s32.totalorder %v2489_v63, 1  ;;  %vm3798_vm15 = vcmp.eq.s32.totalorder %v2549_v42, 1  ;;  %3814 = vst [vmem:[#allocation81_spill] sm:$0xff] %v3047_v14 }
 0x1d8   :  { %3795 = vst [vmem:[#allocation73_spill] sm:$0xff] %v2962_v35  ;;  %v2968_v19 = vsel %vm3796_vm10, %v2924_v40, -inf  ;;  %v2973_v6 = vsel %vm3797_vm12, %v2924_v40, -inf  ;;  %v2979_v55 = vsel %vm3798_vm15, %v2924_v40, -inf  ;;  %vm3799_vm7 = vcmp.eq.s32.totalorder %v2629_v51, 1  ;;  %v2059_v13 = vpop.f32.mrf.mxu1 }
 0x1d9   :  { %v2984_v36 = vsel %vm3799_vm7, %v2924_v40, -inf  ;;  %vm3801_vm3 = vcmp.eq.s32.totalorder %v2710_v50, 1  ;;  %v2994_v18 = vsel %vm1308_vm9, %v2924_v40, -inf  ;;  %v2998_v42 = vmax.f32 %v438_v43, 0.0 }
 0x1da   :  { %3800 = vst [vmem:[#allocation74_spill] sm:$0xff] %v2984_v36  ;;  %v2989_v59 = vsel %vm3801_vm3, %v2924_v40, -inf  ;;  %3803 = vst [vmem:[#allocation76_spill] sm:$0xff] %v2994_v18  ;;  %v430_v51 = vadd.f32 %v2849_v1, %v429_v30  ;;  %vm3805_vm15 = vcmp.eq.s32.totalorder %v2483_v60, 1  ;;  %vm3806_vm7 = vcmp.eq.s32.totalorder %v2505_v9, 1 }
 0x1db   :  { %3802 = vst [vmem:[#allocation75_spill] sm:$0xff] %v2989_v59  ;;  %3804 = vst [vmem:[#allocation77_spill] sm:$0xff] %v2998_v42  ;;  %v3004_v34 = vsel %vm3805_vm15, %v2962_v35, -inf  ;;  %v3009_v50 = vsel %vm3806_vm7, %v2962_v35, -inf  ;;  %vm650_vm9 = vcmp.eq.s32.totalorder %v2586_v17, 1  ;;  %vm783_vm3 = vcmp.eq.s32.totalorder %v2606_v39, 1 }
 0x1dc   :  { %vm3807_vm12 = vcmp.eq.s32.totalorder %v2538_v33, 1  ;;  %vm3808_vm10 = vcmp.eq.s32.totalorder %v2620_v44, 1  ;;  %vm3809_vm15 = vcmp.eq.s32.totalorder %v2697_v61, 1  ;;  %v3031_v30 = vsel %vm1306_vm0, %v2962_v35, -inf  ;;  %v3034_v33 = vpop.permute.xlu0 %1415 }
 0x1dd   :  { %v3016_v43 = vsel %vm3807_vm12, %v2962_v35, -inf  ;;  %v3021_v60 = vsel %vm3808_vm10, %v2962_v35, -inf  ;;  %v3026_v9 = vsel %vm3809_vm15, %v2962_v35, -inf  ;;  %3811 = vst [vmem:[#allocation79_spill] sm:$0xff] %v3031_v30  ;;  %vm916_vm7 = vcmp.eq.s32.totalorder %v2681_v27, 1  ;;  %3812 = vst [vmem:[#allocation80_spill] sm:$0xff] %v3034_v33  ;;  %v432_v35 = vpop.f32.mrf.mxu1 }
 0x1de   :  { %3810 = vst [vmem:[#allocation78_spill] sm:$0xff] %v3026_v9  ;;  %v3036_v40 = vmax.f32 %v430_v51, 0.0  ;;  %v441_v44 = vadd.f32 %v2059_v13, %v2849_v1  ;;  %v662_v18 = vsel %vm646_vm14, %v2998_v42, -inf  ;;  %vm3813_vm10 = vcmp.eq.s32.totalorder %v2532_v29, 1 }
 0x1df   :  { %v795_v61 = vsel %vm3813_vm10, %v2998_v42, -inf  ;;  %vm648_vm12 = vcmp.eq.s32.totalorder %v2577_v2, 1  ;;  %vm781_vm0 = vcmp.eq.s32.totalorder %v2597_v31, 1  ;;  %v674_v51 = vmax.f32 %v2894_v26, %v662_v18  ;;  %v2062_v26 = vpop.f32.mrf.mxu1 }
 0x1e0   :  { %v807_v30 = vmax.f32 %v2899_v11, %v795_v61  ;;  %vm3815_vm15 = vcmp.eq.s32.totalorder %v2566_v52, 1  ;;  %v3059_v29 = vsel %vm1045_vm13, %v2998_v42, -inf  ;;  %vm914_vm14 = vcmp.eq.s32.totalorder %v2670_v49, 1  ;;  %v3826_v49 = vld [vmem:[#allocation21_spill] sm:$0xff] }
 0x1e1   :  { %v3054_v4 = vsel %vm3815_vm15, %v2998_v42, -inf  ;;  %v3062_v13 = vmax.f32 %v441_v44, 0.0  ;;  %v433_v38 = vadd.f32 %v2849_v1, %v432_v35  ;;  %v660_v11 = vsel %vm644_vm4, %v3036_v40, -inf }
 0x1e2   :  { %v793_v52 = vsel %vm777_vm11, %v3036_v40, -inf  ;;  %vm651_vm10 = vcmp.eq.s32.totalorder %v2589_v21, 1  ;;  %v672_v62 = vmax.f32 %v2930_v45, %v660_v11  ;;  %v3077_v44 = vsel %vm910_vm2, %v3036_v40, -inf  ;;  %v3119_v45 = vpop.permute.xlu1 %1424 }
 0x1e3   :  { %v805_v18 = vmax.f32 %v2935_v48, %v793_v52  ;;  %vm784_vm4 = vcmp.eq.s32.totalorder %v2609_v41, 1  ;;  %vm917_vm13 = vcmp.eq.s32.totalorder %v2685_v53, 1  ;;  %v3083_v25 = vmax.f32 %v433_v38, 0.0  ;;  %v445_v48 = vpop.f32.mrf.mxu1  ;;  %3818 = vst [vmem:[#allocation82_spill] sm:$0xff] %v3119_v45 }
 0x1e4   :  { %v454_v35 = vadd.f32 %v2062_v26, %v2849_v1  ;;  %v663_v46 = vsel %vm647_vm6, %v3062_v13, -inf  ;;  %vm649_vm11 = vcmp.eq.s32.totalorder %v2580_v5, 1  ;;  %v3096_v11 = vsel %vm780_vm5, %v3062_v13, -inf  ;;  %v3107_v26 = vpop.permute.xlu0 %1421 }
 0x1e5   :  { %v675_v61 = vmax.f32 %v2968_v19, %v663_v46  ;;  %v3101_v38 = vsel %vm913_vm8, %v3062_v13, -inf  ;;  %vm782_vm2 = vcmp.eq.s32.totalorder %v2600_v37, 1  ;;  %3817 = vst [vmem:[#allocation16_spill] sm:$0xff] %v3107_v26  ;;  %v446_v28 = vadd.f32 %v2849_v1, %v445_v48  ;;  %v2063_v0 = vpop.f32.mrf.mxu1 }
 0x1e6   :  { %v3109_v19 = vmax.f32 %v454_v35, 0.0  ;;  %v661_v58 = vsel %vm645_vm1, %v3083_v25, -inf  ;;  %vm654_vm5 = vcmp.eq.s32.totalorder %v2735_v10, 1  ;;  %vm3819_vm15 = vcmp.eq.s32.totalorder %v2521_v24, 1  ;;  %v3836_v10 = vld [vmem:[#allocation25_spill] sm:$0xff] }
 0x1e7   :  { %v673_v52 = vmax.f32 %v3004_v34, %v661_v58  ;;  %v794_v35 = vsel %vm3819_vm15, %v3083_v25, -inf  ;;  %v808_v48 = vmax.f32 %v2973_v6, %v3096_v11  ;;  %vm3820_vm6 = vcmp.eq.s32.totalorder %v2560_v47, 1  ;;  %v448_v47 = vpop.f32.mrf.mxu1 }
 0x1e8   :  { %v3130_v63 = vsel %vm3820_vm6, %v3083_v25, -inf  ;;  %vm920_vm1 = vcmp.eq.s32.totalorder %v2777_v32, 1  ;;  %v3133_v46 = vmax.f32 %v446_v28, 0.0  ;;  %v457_v26 = vadd.f32 %v2063_v0, %v2849_v1  ;;  %v3821_v0 = vld [vmem:[#allocation33_spill] sm:$0xff]  ;;  %v3176_v31 = vpop.permute.xlu0 %1294 }
 0x1e9   :  { %v666_v34 = vsel %vm650_vm9, %v3109_v19, -inf  ;;  %v799_v24 = vsel %vm783_vm3, %v3109_v19, -inf  ;;  %vm652_vm15 = vcmp.eq.s32.totalorder %v2731_v22, 1  ;;  %vm785_vm8 = vcmp.eq.s32.totalorder %v2739_v7, 1  ;;  %v2066_v27 = vpop.f32.mrf.mxu1  ;;  %3825 = vst [vmem:[#allocation33_spill] sm:$0xff] %v3176_v31 }
 0x1ea   :  { %v3144_v6 = vmax.f32 %v674_v51, %v666_v34  ;;  %v806_v11 = vmax.f32 %v3009_v50, %v794_v35  ;;  %v3147_v28 = vmax.f32 %v807_v30, %v799_v24  ;;  %v3152_v17 = vsel %vm916_vm7, %v3109_v19, -inf  ;;  %v3822_v30 = vld [vmem:[#allocation22_spill] sm:$0xff]  ;;  %v3823_v35 = vld [vmem:[#allocation24_spill] sm:$0xff] }
 0x1eb   :  { %vm918_vm9 = vcmp.eq.s32.totalorder %v3821_v0, 1  ;;  %v3155_v39 = vmax.f32 %v457_v26, 0.0  ;;  %v449_v58 = vadd.f32 %v2849_v1, %v448_v47  ;;  %v664_v51 = vsel %vm648_vm12, %v3133_v46, -inf  ;;  %v3824_v47 = vld [vmem:[#allocation35_spill] sm:$0xff] }
 0x1ec   :  { %v797_v50 = vsel %vm781_vm0, %v3133_v46, -inf  ;;  %vm655_vm3 = vcmp.eq.s32.totalorder %v3822_v30, 1  ;;  %vm788_vm6 = vcmp.eq.s32.totalorder %v3823_v35, 1  ;;  %v3166_v34 = vmax.f32 %v672_v62, %v664_v51  ;;  %v3827_v51 = vld [vmem:[#allocation23_spill] sm:$0xff]  ;;  %v3234_v31 = vpop.permute.xlu0 %1300 }
 0x1ed   :  { %v3168_v24 = vmax.f32 %v805_v18, %v797_v50  ;;  %v930_v26 = vsel %vm914_vm14, %v3133_v46, -inf  ;;  %v939_v2 = vmax.f32 %v3016_v43, %v3130_v63  ;;  %vm921_vm7 = vcmp.eq.s32.totalorder %v3824_v47, 1  ;;  %v3828_v43 = vld [vmem:[#allocation34_spill] sm:$0xff]  ;;  %v3189_v63 = vpop.permute.xlu1 %1297  ;;  %v461_v50 = vpop.f32.mrf.mxu1  ;;  %3837 = vst [vmem:[#allocation24_spill] sm:$0xff] %v3234_v31 }
 0x1ee   :  { %v3178_v45 = vmax.f32 %v449_v58, 0.0  ;;  %v470_v33 = vadd.f32 %v2066_v27, %v2849_v1  ;;  %v667_v18 = vsel %vm651_vm10, %v3155_v39, -inf  ;;  %vm653_vm12 = vcmp.eq.s32.totalorder %v3826_v49, 1  ;;  %3829 = vst [vmem:[#allocation22_spill] sm:$0xff] %v3189_v63 }
 0x1ef   :  { %vm786_vm0 = vcmp.eq.s32.totalorder %v3827_v51, 1  ;;  %vm919_vm14 = vcmp.eq.s32.totalorder %v3828_v43, 1  ;;  %v679_v58 = vmax.f32 %v675_v61, %v667_v18  ;;  %v800_v27 = vsel %vm784_vm4, %v3155_v39, -inf  ;;  %v2067_v41 = vpop.f32.mrf.mxu1  ;;  %v3848_v43 = vld [vmem:[#allocation18_spill] sm:$0xff] }
 0x1f0   :  { %v933_v62 = vsel %vm917_vm13, %v3155_v39, -inf  ;;  %v941_v21 = vmax.f32 %v2979_v55, %v3101_v38  ;;  %v3199_v14 = vmax.f32 %v470_v33, 0.0  ;;  %v462_v59 = vadd.f32 %v2849_v1, %v461_v50  ;;  %v3831_v33 = vld [vmem:[#allocation14_spill] sm:$0xff]  ;;  %v3832_v38 = vld [vmem:[#allocation13_spill] sm:$0xff] }
 0x1f1   :  { %v665_v61 = vsel %vm649_vm11, %v3178_v45, -inf  ;;  %v798_v53 = vsel %vm782_vm2, %v3178_v45, -inf  ;;  %v812_v12 = vmax.f32 %v808_v48, %v800_v27  ;;  %vm3830_vm10 = vcmp.eq.s32.totalorder %v3816_v3, 1  ;;  %v3834_v48 = vld [vmem:[#allocation15_spill] sm:$0xff]  ;;  %v464_v3 = vpop.f32.mrf.mxu1 }
 0x1f2   :  { %v677_v18 = vmax.f32 %v673_v52, %v665_v61  ;;  %v931_v55 = vsel %vm3830_vm10, %v3178_v45, -inf  ;;  %vm1044_vm4 = vcmp.eq.s32.totalorder %v3831_v33, 1  ;;  %vm1043_vm13 = vcmp.eq.s32.totalorder %v3832_v38, 1 }
 0x1f3   :  { %v3215_v50 = vmax.f32 %v462_v59, 0.0  ;;  %v473_v5 = vadd.f32 %v2067_v41, %v2849_v1  ;;  %v670_v52 = vsel %vm654_vm5, %v3199_v14, -inf  ;;  %vm3833_vm11 = vcmp.eq.s32.totalorder %v2743_v8, 1  ;;  %v3835_v41 = vld [vmem:[#allocation26_spill] sm:$0xff] }
 0x1f4   :  { %v803_v37 = vsel %vm3833_vm11, %v3199_v14, -inf  ;;  %vm1046_vm2 = vcmp.eq.s32.totalorder %v3834_v48, 1  ;;  %v682_v27 = vmax.f32 %v3144_v6, %v670_v52  ;;  %v810_v61 = vmax.f32 %v806_v11, %v798_v53  ;;  %v3838_v11 = vld [vmem:[#allocation28_spill] sm:$0xff]  ;;  %v3248_v53 = vpop.permute.xlu1 %1303 }
 0x1f5   :  { %v815_v9 = vmax.f32 %v3147_v28, %v803_v37  ;;  %v3230_v59 = vsel %vm920_vm1, %v3199_v14, -inf  ;;  %vm1047_vm5 = vcmp.eq.s32.totalorder %v3836_v10, 1  ;;  %v3236_v8 = vmax.f32 %v473_v5, 0.0  ;;  %v3839_v28 = vld [vmem:[#allocation27_spill] sm:$0xff]  ;;  %3840 = vst [vmem:[#allocation35_spill] sm:$0xff] %v3248_v53  ;;  %v3842_v37 = vld [vmem:[#allocation48_spill] sm:$0xff] }
 0x1f6   :  { %v465_v63 = vadd.f32 %v2849_v1, %v464_v3  ;;  %v668_v6 = vsel %vm652_vm15, %v3215_v50, -inf  ;;  %v801_v32 = vsel %vm785_vm8, %v3215_v50, -inf  ;;  %vm1050_vm1 = vcmp.eq.s32.totalorder %v3838_v11, 1  ;;  %v3843_v3 = vld [vmem:[#allocation49_spill] sm:$0xff] }
 0x1f7   :  { %vm1049_vm11 = vcmp.eq.s32.totalorder %v3839_v28, 1  ;;  %vm1051_vm10 = vcmp.eq.s32.totalorder %v2805_v57, 1  ;;  %v680_v5 = vmax.f32 %v3166_v34, %v668_v6  ;;  %v813_v1 = vmax.f32 %v3168_v24, %v801_v32  ;;  %v3844_v24 = vld [vmem:[#allocation50_spill] sm:$0xff]  ;;  %v3853_v10 = vld [vmem:[#allocation37_spill] sm:$0xff] }
 0x1f8   :  { %v934_v22 = vsel %vm918_vm9, %v3215_v50, -inf  ;;  %v3841_v7 = vmax.f32 %v2943_v23, %v3077_v44  ;;  %vm1052_vm8 = vcmp.eq.s32.totalorder %v3842_v37, 1  ;;  %vm1053_vm15 = vcmp.eq.s32.totalorder %v3843_v3, 1  ;;  %v3294_v36 = vpop.permute.xlu1 %1551 }
 0x1f9   :  { %v3260_v31 = vmax.f32 %v465_v63, 0.0  ;;  %v499_v53 = vpack.c.bf16 %v3236_v8, %v3199_v14  ;;  %v671_v34 = vsel %vm655_vm3, %v3236_v8, -inf  ;;  %v804_v0 = vsel %vm788_vm6, %v3236_v8, -inf }
 0x1fa   :  { %v942_v52 = vmax.f32 %v3841_v7, %v930_v26  ;;  %vm1054_vm9 = vcmp.eq.s32.totalorder %v3844_v24, 1  ;;  %v683_v23 = vmax.f32 %v679_v58, %v671_v34  ;;  %v816_v44 = vmax.f32 %v812_v12, %v804_v0  ;;  %v3845_v58 = vld [vmem:[#allocation17_spill] sm:$0xff]  ;;  %v3287_v7 = vpop.permute.xlu0 %1548 }
 0x1fb   :  { %v937_v26 = vsel %vm921_vm7, %v3236_v8, -inf  ;;  %v943_v63 = vmax.f32 %v939_v2, %v931_v55  ;;  %2069 = vmatpush3.bf16.msra.mxu0 %v499_v53  ;;  %v498_v6 = vpack.c.bf16 %v3260_v31, %v3215_v50  ;;  %v669_v30 = vsel %vm653_vm12, %v3260_v31, -inf }
 0x1fc   :  { %v802_v35 = vsel %vm786_vm0, %v3260_v31, -inf  ;;  %v935_v12 = vsel %vm919_vm14, %v3260_v31, -inf  ;;  %vm1176_vm3 = vcmp.eq.s32.totalorder %v3845_v58, 1  ;;  %v3846_v47 = vmov 0.0   ;;  %v3348_v3 = vpop.permute.xlu1 %1557 }
 0x1fd   :  { %2070 = vmatprep.subr.bf16.mxu0 %v3846_v47  ;;  %v681_v2 = vmax.f32 %v677_v18, %v669_v30  ;;  %v685_v55 = vmax.f32 %v682_v27, %v683_v23  ;;  %v814_v32 = vmax.f32 %v810_v61, %v802_v35  ;;  %v818_v53 = vmax.f32 %v815_v9, %v816_v44  ;;  %v3850_v27 = vld [vmem:[#allocation19_spill] sm:$0xff]  ;;  %v3858_v35 = vld [vmem:[#allocation64_spill] sm:$0xff] }
 0x1fe   :  { %v3847_v49 = vmax.f32 %v2906_v20, %v3054_v4  ;;  %v945_v34 = vmax.f32 %v941_v21, %v933_v62  ;;  %v946_v0 = vmax.f32 %v942_v52, %v934_v22  ;;  %v947_v42 = vmax.f32 %v943_v63, %v935_v12  ;;  %v3849_v21 = vld [vmem:[#allocation20_spill] sm:$0xff]  ;;  %v3854_v22 = vld [vmem:[#allocation39_spill] sm:$0xff]  ;;  %v3335_v57 = vpop.permute.xlu0 %1554 }
 0x1ff   :  { %vm1177_vm6 = vcmp.eq.s32.totalorder %v3848_v43, 1  ;;  %v684_v58 = vmax.f32 %v680_v5, %v681_v2  ;;  %v817_v54 = vmax.f32 %v813_v1, %v814_v32  ;;  %v1059_v9 = vsel %vm1043_vm13, %v3036_v40, -inf  ;;  %2071 = vmatpush3.bf16.msra.mxu0 %v498_v6  ;;  %v3856_v44 = vld [vmem:[#allocation63_spill] sm:$0xff] }
 0x200   :  { %v944_v51 = vmax.f32 %v3847_v49, %v3152_v17  ;;  %v1060_v18 = vsel %vm1044_vm4, %v3083_v25, -inf  ;;  %v949_v4 = vmax.f32 %v945_v34, %v937_v26  ;;  %v950_v17 = vmax.f32 %v946_v0, %v947_v42  ;;  %2072 = vmatprep.subr.bf16.mxu0 %v3846_v47  ;;  %v3859_v2 = vld [vmem:[#allocation67_spill] sm:$0xff]  ;;  %v3862_v34 = vld [vmem:[#allocation30_spill] sm:$0xff]  ;;  %v3863_v0 = vld [vmem:[#allocation29_spill] sm:$0xff] }
 0x201   :  { %v1062_v62 = vsel %vm1046_vm2, %v3062_v13, -inf  ;;  %vm1179_vm7 = vcmp.eq.s32.totalorder %v3849_v21, 1  ;;  %vm1178_vm12 = vcmp.eq.s32.totalorder %v3850_v27, 1  ;;  %v686_v38 = vmax.f32 %v684_v58, %v685_v55  ;;  %v3860_v55 = vld [vmem:[#allocation74_spill] sm:$0xff]  ;;  %v3875_v49 = vld [vmem:[#allocation35_spill] sm:$0xff] }
 0x202   :  { %v948_v20 = vmax.f32 %v944_v51, %v3230_v59  ;;  %v819_v61 = vmax.f32 %v817_v54, %v818_v53  ;;  %v1063_v33 = vsel %vm1047_vm5, %v3133_v46, -inf  ;;  %vm3851_vm0 = vcmp.eq.s32.totalorder %v3835_v41, 1  ;;  %v3852_v59 = vld [vmem:[#allocation36_spill] sm:$0xff]  ;;  %v3855_v41 = vld [vmem:[#allocation38_spill] sm:$0xff] }
 0x203   :  { %v1064_v42 = vsel %vm3851_vm0, %v3178_v45, -inf  ;;  %vm1180_vm14 = vcmp.eq.s32.totalorder %v3852_v59, 1  ;;  %v1065_v5 = vsel %vm1049_vm11, %v3109_v19, -inf  ;;  %v1066_v1 = vsel %vm1050_vm1, %v3155_v39, -inf }
 0x204   :  { %v951_v48 = vmax.f32 %v948_v20, %v949_v4  ;;  %v1067_v54 = vsel %vm1051_vm10, %v3215_v50, -inf  ;;  %vm1181_vm4 = vcmp.eq.s32.totalorder %v3853_v10, 1  ;;  %vm1183_vm13 = vcmp.eq.s32.totalorder %v3854_v22, 1 }
 0x205   :  { %vm1182_vm2 = vcmp.eq.s32.totalorder %v3855_v41, 1  ;;  %v687_v52 = vrot.slane %v686_v38, 4  ;;  %v820_v23 = vrot.slane %v819_v61, 4  ;;  %v1068_v28 = vsel %vm1052_vm8, %v3260_v31, -inf }
 0x206   :  { %v1069_v11 = vsel %vm1053_vm15, %v3199_v14, -inf  ;;  %vm1184_vm5 = vcmp.eq.s32.totalorder %v3856_v44, 1  ;;  %v3857_v26 = vpack.c.bf16 %v3155_v39, %v3109_v19  ;;  %v952_v63 = vmax.f32 %v950_v17, %v951_v48  ;;  %v3867_v48 = vld [vmem:[#allocation51_spill] sm:$0xff] }
 0x207   :  { %v1070_v6 = vsel %vm1054_vm9, %v3236_v8, -inf  ;;  %v1071_v37 = vmax.f32 %v2948_v56, %v1059_v9  ;;  %v1072_v30 = vmax.f32 %v3021_v60, %v1060_v18  ;;  %vm1185_vm10 = vcmp.eq.s32.totalorder %v3858_v35, 1  ;;  %v3881_v44 = vld [vmem:[#allocation71_spill] sm:$0xff]  ;;  %v3883_v35 = vld [vmem:[#allocation68_spill] sm:$0xff] }
 0x208   :  { %2073 = vmatpush3.bf16.msra.mxu0 %v3857_v26  ;;  %vm1187_vm1 = vcmp.eq.s32.totalorder %v2938_v15, 1  ;;  %vm1186_vm11 = vcmp.eq.s32.totalorder %v2922_v16, 1  ;;  %v688_v12 = vmax.f32 %v686_v38, %v687_v52  ;;  %v821_v58 = vmax.f32 %v819_v61, %v820_v23  ;;  %v3371_v26 = vpop.permute.xlu0 %1427 }
 0x209   :  { %2074 = vmatprep.subr.bf16.mxu0 %v3846_v47  ;;  %v1073_v24 = vmax.f32 %v3859_v2, %v3059_v29  ;;  %v1074_v32 = vmax.f32 %v3860_v55, %v1062_v62  ;;  %v953_v56 = vrot.slane %v952_v63, 4  ;;  %v1075_v53 = vmax.f32 %v1071_v37, %v1063_v33  ;;  %v3865_v33 = vld [vmem:[#allocation32_spill] sm:$0xff]  ;;  %v3870_v2 = vld [vmem:[#allocation54_spill] sm:$0xff] }
 0x20a   :  { %v1076_v60 = vmax.f32 %v1072_v30, %v1064_v42  ;;  %v3357_v51 = vsel %vm1176_vm3, %v3036_v40, -inf  ;;  %vm1310_vm8 = vcmp.eq.s32.totalorder %v3862_v34, 1  ;;  %vm1309_vm15 = vcmp.eq.s32.totalorder %v3863_v0, 1  ;;  %v3866_v42 = vld [vmem:[#allocation31_spill] sm:$0xff]  ;;  %v3869_v30 = vld [vmem:[#allocation52_spill] sm:$0xff]  ;;  %v3872_v55 = vld [vmem:[#allocation22_spill] sm:$0xff] }
 0x20b   :  { %v689_v9 = vrot.slane %v688_v12, 2  ;;  %v822_v18 = vrot.slane %v821_v58, 2  ;;  %v1077_v20 = vmax.f32 %v1073_v24, %v1065_v5  ;;  %v1078_v4 = vmax.f32 %v1074_v32, %v1066_v1  ;;  %v3873_v32 = vld [vmem:[#allocation33_spill] sm:$0xff] }
 0x20c   :  { %v3864_v29 = vpack.c.bf16 %v3178_v45, %v3133_v46  ;;  %v954_v17 = vmax.f32 %v952_v63, %v953_v56  ;;  %v1079_v62 = vmax.f32 %v1075_v53, %v1067_v54  ;;  %v1080_v38 = vmax.f32 %v1076_v60, %v1068_v28  ;;  %v3868_v63 = vld [vmem:[#allocation77_spill] sm:$0xff] }
 0x20d   :  { %v1193_v61 = vsel %vm1177_vm6, %v3083_v25, -inf  ;;  %v690_v5 = vmax.f32 %v688_v12, %v689_v9  ;;  %v823_v1 = vmax.f32 %v821_v58, %v822_v18  ;;  %v1081_v52 = vmax.f32 %v1077_v20, %v1069_v11  ;;  %v3871_v12 = vld [vmem:[#allocation53_spill] sm:$0xff]  ;;  %v3382_v11 = vpop.permute.xlu1 %1430  ;;  %v3876_v9 = vld [vmem:[#allocation24_spill] sm:$0xff] }
 0x20e   :  { %2075 = vmatpush3.bf16.msra.mxu0 %v3864_v29  ;;  %v1082_v23 = vmax.f32 %v1078_v4, %v1070_v6  ;;  %v955_v54 = vrot.slane %v954_v17, 2  ;;  %v1083_v28 = vmax.f32 %v1079_v62, %v1080_v38  ;;  %v1194_v43 = vsel %vm1178_vm12, %v3868_v63, -inf  ;;  %v3879_v62 = vld [vmem:[#allocation41_spill] sm:$0xff]  ;;  %v3880_v38 = vld [vmem:[#allocation40_spill] sm:$0xff] }
 0x20f   :  { %2076 = vmatprep.subr.bf16.mxu0 %v3846_v47  ;;  %v1195_v37 = vsel %vm1179_vm7, %v3062_v13, -inf  ;;  %vm1314_vm6 = vcmp.eq.s32.totalorder %v3869_v30, 1  ;;  %vm1316_vm0 = vcmp.eq.s32.totalorder %v3870_v2, 1  ;;  %vm1315_vm9 = vcmp.eq.s32.totalorder %v3871_v12, 1 }
 0x210   :  { %v691_v6 = vrot.slane %v690_v5, 1  ;;  %v824_v58 = vrot.slane %v823_v1, 1  ;;  %v1084_v24 = vmax.f32 %v1081_v52, %v1082_v23  ;;  %v1196_v27 = vsel %vm1180_vm14, %v3133_v46, -inf  ;;  %v3882_v52 = vld [vmem:[#allocation78_spill] sm:$0xff] }
 0x211   :  { %vm1318_vm12 = vcmp.eq.s32.totalorder %v3872_v55, 1  ;;  %vm1317_vm3 = vcmp.eq.s32.totalorder %v3873_v32, 1  ;;  %v3874_v21 = vpack.c.bf16 %v3062_v13, %v3868_v63  ;;  %v956_v56 = vmax.f32 %v954_v17, %v955_v54 }
 0x212   :  { %v1197_v53 = vsel %vm1181_vm4, %v3178_v45, -inf  ;;  %v1198_v60 = vsel %vm1182_vm2, %v3109_v19, -inf  ;;  %v1199_v59 = vsel %vm1183_vm13, %v3155_v39, -inf  ;;  %vm1320_vm7 = vcmp.eq.s32.totalorder %v3875_v49, 1 }
 0x213   :  { %2077 = vmatpush3.bf16.msra.mxu0 %v3874_v21  ;;  %vm1319_vm14 = vcmp.eq.s32.totalorder %v3876_v9, 1  ;;  %v3404_v18 = vmax.f32 %v690_v5, %v691_v6  ;;  %v3406_v20 = vmax.f32 %v823_v1, %v824_v58  ;;  %v1085_v10 = vmax.f32 %v1083_v28, %v1084_v24  ;;  %v3426_v28 = vpop.permute.xlu0 %1433  ;;  %v3886_v6 = vld [vmem:[#allocation75_spill] sm:$0xff]  ;;  %v3442_v21 = vpop.permute.xlu1 %1436 }
 0x214   :  { %2078 = vmatprep.subr.bf16.mxu0 %v3846_v47  ;;  %v1200_v41 = vsel %vm1184_vm5, %v3215_v50, -inf  ;;  %v957_v4 = vrot.slane %v956_v56, 1  ;;  %v1201_v22 = vsel %vm1185_vm10, %v3260_v31, -inf  ;;  %v1202_v29 = vsel %vm1186_vm11, %v3199_v14, -inf  ;;  %3889 = vst [vmem:[#allocation14_spill] sm:$0xff] %v3442_v21 }
 0x215   :  { %3877 = vst [vmem:[#allocation21_spill] sm:$0xff] %v3404_v18  ;;  %3878 = vst [vmem:[#allocation23_spill] sm:$0xff] %v3406_v20  ;;  %v1203_v17 = vsel %vm1187_vm1, %v3236_v8, -inf  ;;  %vm1439_vm4 = vcmp.eq.s32.totalorder %v3879_v62, 1  ;;  %vm1438_vm13 = vcmp.eq.s32.totalorder %v3880_v38, 1  ;;  %v1086_v5 = vrot.slane %v1085_v10, 4 }
 0x216   :  { %v1204_v1 = vmax.f32 %v3881_v44, %v3357_v51  ;;  %v1205_v23 = vmax.f32 %v3882_v52, %v1193_v61  ;;  %v1206_v54 = vmax.f32 %v3883_v35, %v1194_v43  ;;  %v3884_v16 = vpack.c.bf16 %v3083_v25, %v3036_v40  ;;  %v3887_v61 = vld [vmem:[#allocation43_spill] sm:$0xff]  ;;  %v3888_v43 = vld [vmem:[#allocation42_spill] sm:$0xff]  ;;  %v3890_v52 = vld [vmem:[#allocation44_spill] sm:$0xff] }
 0x217   :  { %v3431_v15 = vmax.f32 %v956_v56, %v957_v4  ;;  %v1207_v58 = vmax.f32 %v3886_v6, %v1195_v37  ;;  %v1325_v24 = vsel %vm1309_vm15, %v3036_v40, -inf  ;;  %v1326_v51 = vsel %vm1310_vm8, %v3083_v25, -inf  ;;  %v3894_v6 = vld [vmem:[#allocation45_spill] sm:$0xff]  ;;  %v3481_v2 = vpop.permute.xlu0 %1560  ;;  %v3907_v20 = vld [vmem:[#allocation66_spill] sm:$0xff] }
 0x218   :  { %2079 = vmatpush3.bf16.msra.mxu0 %v3884_v16  ;;  %v1087_v56 = vmax.f32 %v1085_v10, %v1086_v5  ;;  %v1208_v4 = vmax.f32 %v1204_v1, %v1196_v27  ;;  %v1209_v44 = vmax.f32 %v1205_v23, %v1197_v53  ;;  %v1210_v37 = vmax.f32 %v1206_v54, %v1198_v60  ;;  %v3895_v27 = vld [vmem:[#allocation47_spill] sm:$0xff]  ;;  %v3896_v53 = vld [vmem:[#allocation46_spill] sm:$0xff]  ;;  %v3898_v1 = vld [vmem:[#allocation80_spill] sm:$0xff] }
 0x219   :  { %3885 = vst [vmem:[#allocation34_spill] sm:$0xff] %v3431_v15  ;;  %2080 = vmatprep.subr.bf16.mxu0 %v3846_v47  ;;  %v1211_v0 = vmax.f32 %v1207_v58, %v1199_v59  ;;  %vm3891_vm1 = vcmp.eq.s32.totalorder %v3866_v42, 1  ;;  %vm3892_vm11 = vcmp.eq.s32.totalorder %v3865_v33, 1  ;;  %vm3893_vm8 = vcmp.eq.s32.totalorder %v3867_v48, 1  ;;  %v3897_v42 = vld [vmem:[#allocation81_spill] sm:$0xff]  ;;  %v3904_v47 = vld [vmem:[#allocation76_spill] sm:$0xff] }
 0x21a   :  { %v1327_v34 = vsel %vm3891_vm1, %v3868_v63, -inf  ;;  %v1328_v35 = vsel %vm3892_vm11, %v3062_v13, -inf  ;;  %v1329_v16 = vsel %vm3893_vm8, %v3133_v46, -inf  ;;  %vm1443_vm15 = vcmp.eq.s32.totalorder %v3894_v6, 1 }
 0x21b   :  { %vm1445_vm2 = vcmp.eq.s32.totalorder %v3895_v27, 1  ;;  %vm1444_vm5 = vcmp.eq.s32.totalorder %v3896_v53, 1  ;;  %v1088_v60 = vrot.slane %v1087_v56, 2  ;;  %v1212_v59 = vmax.f32 %v1208_v4, %v1200_v41  ;;  %v3899_v41 = vld [vmem:[#allocation82_spill] sm:$0xff]  ;;  %v3901_v4 = vld [vmem:[#allocation72_spill] sm:$0xff] }
 0x21c   :  { %v1213_v10 = vmax.f32 %v1209_v44, %v1201_v22  ;;  %v1214_v5 = vmax.f32 %v1210_v37, %v1202_v29  ;;  %vm1446_vm10 = vcmp.eq.s32.totalorder %v3898_v1, 1  ;;  %v1215_v33 = vmax.f32 %v1211_v0, %v1203_v17  ;;  %v3900_v22 = vld [vmem:[#allocation16_spill] sm:$0xff]  ;;  %v3490_v44 = vpop.permute.xlu1 %1563  ;;  %v3902_v0 = vld [vmem:[#allocation79_spill] sm:$0xff] }
 0x21d   :  { %v1330_v48 = vsel %vm1314_vm6, %v3178_v45, -inf  ;;  %v1331_v23 = vsel %vm1315_vm9, %v3109_v19, -inf  ;;  %v1332_v54 = vsel %vm1316_vm0, %v3155_v39, -inf  ;;  %vm1449_vm11 = vcmp.eq.s32.totalorder %v3899_v41, 1 }
 0x21e   :  { %vm1448_vm8 = vcmp.eq.s32.totalorder %v3900_v22, 1  ;;  %vm1450_vm1 = vcmp.eq.s32.totalorder %v3371_v26, 1  ;;  %v1089_v29 = vmax.f32 %v1087_v56, %v1088_v60  ;;  %v1216_v17 = vmax.f32 %v1212_v59, %v1213_v10  ;;  %v3903_v59 = vld [vmem:[#allocation69_spill] sm:$0xff] }
 0x21f   :  { %v1333_v30 = vsel %vm1317_vm3, %v3215_v50, -inf  ;;  %v1334_v12 = vsel %vm1318_vm12, %v3260_v31, -inf  ;;  %vm1451_vm9 = vcmp.eq.s32.totalorder %v3382_v11, 1  ;;  %vm1453_vm0 = vcmp.eq.s32.totalorder %v3442_v21, 1 }
 0x220   :  { %vm1452_vm6 = vcmp.eq.s32.totalorder %v3426_v28, 1  ;;  %v1217_v58 = vmax.f32 %v1214_v5, %v1215_v33  ;;  %v1335_v56 = vsel %vm1319_vm14, %v3199_v14, -inf  ;;  %v1336_v32 = vsel %vm1320_vm7, %v3236_v8, -inf  ;;  %v3905_v5 = vld [vmem:[#allocation56_spill] sm:$0xff]  ;;  %v3906_v33 = vld [vmem:[#allocation55_spill] sm:$0xff] }
 0x221   :  { %v1337_v55 = vmax.f32 %v3901_v4, %v1325_v24  ;;  %v1090_v37 = vrot.slane %v1089_v29, 1  ;;  %v1338_v60 = vmax.f32 %v3902_v0, %v1326_v51  ;;  %v1339_v10 = vmax.f32 %v3903_v59, %v1327_v34  ;;  %v3908_v24 = vld [vmem:[#allocation73_spill] sm:$0xff] }
 0x222   :  { %v1340_v15 = vmax.f32 %v3904_v47, %v1328_v35  ;;  %vm1571_vm12 = vcmp.eq.s32.totalorder %v3906_v33, 1  ;;  %v1218_v9 = vmax.f32 %v1216_v17, %v1217_v58  ;;  %v1454_v49 = vsel %vm1438_vm13, %v3907_v20, -inf  ;;  %v3909_v47 = vld [vmem:[#allocation58_spill] sm:$0xff]  ;;  %v3910_v35 = vld [vmem:[#allocation57_spill] sm:$0xff] }
 0x223   :  { %v1341_v18 = vmax.f32 %v1337_v55, %v1329_v16  ;;  %v1455_v4 = vsel %vm1439_vm4, %v3908_v24, -inf  ;;  %v3503_v21 = vmax.f32 %v1089_v29, %v1090_v37  ;;  %v1342_v51 = vmax.f32 %v1338_v60, %v1330_v48  ;;  %v3911_v16 = vld [vmem:[#allocation65_spill] sm:$0xff]  ;;  %v3913_v58 = vld [vmem:[#allocation70_spill] sm:$0xff]  ;;  %v3916_v48 = vld [vmem:[#allocation60_spill] sm:$0xff] }
 0x224   :  { %v1343_v34 = vmax.f32 %v1339_v10, %v1331_v23  ;;  %v1344_v0 = vmax.f32 %v1340_v15, %v1332_v54  ;;  %v1219_v59 = vrot.slane %v1218_v9, 4  ;;  %vm3912_vm3 = vcmp.eq.s32.totalorder %v3888_v43, 1  ;;  %v3917_v23 = vld [vmem:[#allocation59_spill] sm:$0xff] }
 0x225   :  { %v1345_v17 = vmax.f32 %v1341_v18, %v1333_v30  ;;  %v1456_v38 = vsel %vm3912_vm3, %v3911_v16, -inf  ;;  %vm3914_vm13 = vcmp.eq.s32.totalorder %v3887_v61, 1  ;;  %v1346_v55 = vmax.f32 %v1342_v51, %v1334_v12  ;;  %v3518_v18 = vpop.permute.xlu0 %1566  ;;  %v3918_v30 = vld [vmem:[#allocation62_spill] sm:$0xff]  ;;  %v3919_v12 = vld [vmem:[#allocation61_spill] sm:$0xff] }
 0x226   :  { %v1457_v62 = vsel %vm3914_vm13, %v3913_v58, -inf  ;;  %v1347_v29 = vmax.f32 %v1343_v34, %v1335_v56  ;;  %v1348_v37 = vmax.f32 %v1344_v0, %v1336_v32  ;;  %vm3915_vm4 = vcmp.eq.s32.totalorder %v3890_v52, 1  ;;  %v3532_v56 = vpop.permute.xlu1 %1569 }
 0x227   :  { %v1458_v15 = vsel %vm3915_vm4, %v3036_v40, -inf  ;;  %vm1576_vm7 = vcmp.eq.s32.totalorder %v3916_v48, 1  ;;  %vm1575_vm14 = vcmp.eq.s32.totalorder %v3917_v23, 1  ;;  %v1220_v54 = vmax.f32 %v1218_v9, %v1219_v59 }
 0x228   :  { %v1459_v43 = vsel %vm1443_vm15, %v3083_v25, -inf  ;;  %v1460_v61 = vsel %vm1444_vm5, %v3868_v63, -inf  ;;  %v1461_v52 = vsel %vm1445_vm2, %v3062_v13, -inf  ;;  %vm1578_vm3 = vcmp.eq.s32.totalorder %v3918_v30, 1 }
 0x229   :  { %vm1577_vm13 = vcmp.eq.s32.totalorder %v3919_v12, 1  ;;  %v1349_v32 = vmax.f32 %v1345_v17, %v1346_v55  ;;  %v1350_v60 = vmax.f32 %v1347_v29, %v1348_v37  ;;  %v1462_v6 = vsel %vm1446_vm10, %v3133_v46, -inf }
 0x22a   :  { %vm3920_vm5 = vcmp.eq.s32.totalorder %v3897_v42, 1  ;;  %v1221_v27 = vrot.slane %v1220_v54, 2  ;;  %v1464_v10 = vsel %vm1448_vm8, %v3109_v19, -inf  ;;  %v1465_v9 = vsel %vm1449_vm11, %v3155_v39, -inf }
 0x22b   :  { %v1463_v53 = vsel %vm3920_vm5, %v3178_v45, -inf  ;;  %v1466_v1 = vsel %vm1450_vm1, %v3215_v50, -inf  ;;  %vm1582_vm10 = vcmp.eq.s32.totalorder %v3348_v3, 1  ;;  %vm1584_vm5 = vcmp.eq.s32.totalorder %v3490_v44, 1 }
 0x22c   :  { %vm1583_vm2 = vcmp.eq.s32.totalorder %v3481_v2, 1  ;;  %vm1585_vm15 = vcmp.eq.s32.totalorder %v3518_v18, 1  ;;  %vm1624_vm4 = vcmask 1040384   ;;  %v1351_v42 = vmax.f32 %v1349_v32, %v1350_v60  ;;  %v3928_v2 = vld [vmem:[#allocation23_spill] sm:$0xff] }
 0x22d   :  { %v1467_v22 = vsel %vm1451_vm9, %v3260_v31, -inf  ;;  %v1468_v41 = vsel %vm1452_vm6, %v3199_v14, -inf  ;;  %v1469_v51 = vsel %vm1453_vm0, %v3236_v8, -inf  ;;  %vm1586_vm1 = vcmp.eq.s32.totalorder %v3532_v56, 1 }
 0x22e   :  { %v1222_v34 = vmax.f32 %v1220_v54, %v1221_v27  ;;  %v1470_v0 = vmax.f32 %v1454_v49, %v1458_v15  ;;  %v1471_v59 = vmax.f32 %v1455_v4, %v1459_v43  ;;  %v1472_v17 = vmax.f32 %v1456_v38, %v1460_v61 }
 0x22f   :  { %v1352_v55 = vrot.slane %v1351_v42, 4  ;;  %v1473_v29 = vmax.f32 %v1457_v62, %v1461_v52  ;;  %v1587_v11 = vsel %vm1571_vm12, %v3907_v20, -inf  ;;  %vm3922_vm9 = vcmp.eq.s32.totalorder %v3905_v5, 1 }
 0x230   :  { %v1588_v28 = vsel %vm3922_vm9, %v3908_v24, -inf  ;;  %vm1630_vm6 = vcmask 1043456   ;;  %v1223_v37 = vrot.slane %v1222_v34, 1  ;;  %v1474_v32 = vmax.f32 %v1470_v0, %v1462_v6 }
 0x231   :  { %v1475_v60 = vmax.f32 %v1471_v59, %v1463_v53  ;;  %v1476_v26 = vmax.f32 %v1472_v17, %v1464_v10  ;;  %vm1632_vm0 = vcmask 1044480   ;;  %v1353_v49 = vmax.f32 %v1351_v42, %v1352_v55 }
 0x232   :  { %v1477_v4 = vmax.f32 %v1473_v29, %v1465_v9  ;;  %vm3923_vm8 = vcmp.eq.s32.totalorder %v3910_v35, 1  ;;  %vm3924_vm11 = vcmp.eq.s32.totalorder %v3909_v47, 1  ;;  %v1224_v62 = vmax.f32 %v1222_v34, %v1223_v37  ;;  %v3930_v9 = vld [vmem:[#allocation34_spill] sm:$0xff] }
 0x233   :  { %v1589_v38 = vsel %vm3923_vm8, %v3911_v16, -inf  ;;  %v1590_v33 = vsel %vm3924_vm11, %v3913_v58, -inf  ;;  %v1478_v15 = vmax.f32 %v1474_v32, %v1466_v1  ;;  %v1479_v5 = vmax.f32 %v1475_v60, %v1467_v22 }
 0x234   :  { %v1480_v54 = vmax.f32 %v1476_v26, %v1468_v41  ;;  %v1354_v43 = vrot.slane %v1353_v49, 2  ;;  %v1481_v61 = vmax.f32 %v1477_v4, %v1469_v51  ;;  %v1591_v52 = vsel %vm1575_vm14, %v3036_v40, -inf }
 0x235   :  { %v1592_v6 = vsel %vm1576_vm7, %v3083_v25, -inf  ;;  %v1482_v35 = vmax.f32 %v1478_v15, %v1479_v5  ;;  %v1593_v47 = vsel %vm1577_vm13, %v3868_v63, -inf  ;;  %v1594_v53 = vsel %vm1578_vm3, %v3062_v13, -inf  ;;  %v2171_v15 = vld [vmem:[#allocation7 + $0x88] sm:$0xff]   ;;  %v2172_v5 = vld [vmem:[#allocation7 + $0x80] sm:$0xff]  }
 0x236   :  { %vm3925_vm12 = vcmp.eq.s32.totalorder %v3287_v7, 1  ;;  %v1355_v10 = vmax.f32 %v1353_v49, %v1354_v43  ;;  %v1483_v23 = vmax.f32 %v1480_v54, %v1481_v61  ;;  %vm3926_vm14 = vcmp.eq.s32.totalorder %v3294_v36, 1  ;;  %2101 = vmatpush3.bf16.msra.mxu1 %v2171_v15  ;;  %v2173_v54 = vld [vmem:[#allocation7 + $0xf8] sm:$0xff]   ;;  %v2174_v43 = vld [vmem:[#allocation7 + $0xf0] sm:$0xff]   ;;  %v2175_v61 = vld [vmem:[#allocation7 + $0xe8] sm:$0xff]  }
 0x237   :  { %v1595_v27 = vsel %vm3925_vm12, %v3133_v46, -inf  ;;  %v1596_v40 = vsel %vm3926_vm14, %v3178_v45, -inf  ;;  %vm3927_vm7 = vcmp.eq.s32.totalorder %v3335_v57, 1  ;;  %v1598_v63 = vsel %vm1582_vm10, %v3155_v39, -inf }
 0x238   :  { %v1597_v25 = vsel %vm3927_vm7, %v3109_v19, -inf  ;;  %v1599_v13 = vsel %vm1583_vm2, %v3215_v50, -inf  ;;  %v1600_v46 = vsel %vm1584_vm5, %v3260_v31, -inf  ;;  %v1601_v36 = vsel %vm1585_vm15, %v3199_v14, -inf  ;;  %v3929_v50 = vld [vmem:[#allocation21_spill] sm:$0xff] }
 0x239   :  { %v1356_v45 = vrot.slane %v1355_v10, 1  ;;  %v1484_v7 = vmax.f32 %v1482_v35, %v1483_v23  ;;  %v1602_v19 = vsel %vm1586_vm1, %v3236_v8, -inf  ;;  %v1603_v57 = vmax.f32 %v1587_v11, %v1591_v52  ;;  %v2176_v52 = vld [vmem:[#allocation7 + $0xe0] sm:$0xff]   ;;  %v2178_v35 = vld [vmem:[#allocation7 + $0xd0] sm:$0xff]  }
 0x23a   :  { %v1604_v39 = vmax.f32 %v1588_v28, %v1592_v6  ;;  %v1605_v3 = vmax.f32 %v1589_v38, %v1593_v47  ;;  %v1606_v48 = vmax.f32 %v1590_v33, %v1594_v53  ;;  %v1625_v30 = vsel %vm1624_vm4, %v3929_v50, %v3928_v2  ;;  %v2177_v6 = vld [vmem:[#allocation7 + $0xd8] sm:$0xff]   ;;  %v1650_v47 = vpop.permute.xlu0 %1649  ;;  %v1659_v53 = vpop.permute.xlu1 %1658 }
 0x23b   :  { %v1357_v44 = vmax.f32 %v1355_v10, %v1356_v45  ;;  %v1485_v31 = vrot.slane %v1484_v7, 4  ;;  %v1607_v12 = vmax.f32 %v1603_v57, %v1595_v27  ;;  %vm3931_vm3 = vcmask 1041408   ;;  %v2179_v45 = vld [vmem:[#allocation7 + $0xc8] sm:$0xff]  }
 0x23c   :  { %v1627_v14 = vsel %vm3931_vm3, %v1625_v30, %v3930_v9  ;;  %v1608_v18 = vmax.f32 %v1604_v39, %v1596_v40  ;;  %v1609_v1 = vmax.f32 %v1605_v3, %v1597_v25  ;;  %v1610_v42 = vmax.f32 %v1606_v48, %v1598_v63 }
 0x23d   :  { %vm3932_vm13 = vcmask 1042432   ;;  %v1486_v56 = vmax.f32 %v1484_v7, %v1485_v31  ;;  %v1611_v22 = vmax.f32 %v1607_v12, %v1599_v13  ;;  %v493_v51 = vpack.c.bf16 %v3913_v58, %v3911_v16  ;;  %v501_v16 = vld [vmem:[%s3651_s1] sm:$0xf] }
 0x23e   :  { %v1629_v8 = vsel %vm3932_vm13, %v1627_v14, %v3503_v21  ;;  %v1612_v34 = vmax.f32 %v1608_v18, %v1600_v46  ;;  %v1613_v0 = vmax.f32 %v1609_v1, %v1601_v36  ;;  %v1614_v59 = vmax.f32 %v1610_v42, %v1602_v19  ;;  %v2180_v7 = vld [vmem:[#allocation7 + $0xc0] sm:$0xff]  }
 0x23f   :  { %v1631_v41 = vsel %vm1630_vm6, %v1629_v8, %v1224_v62  ;;  %v1487_v55 = vrot.slane %v1486_v56, 2  ;;  %2081 = vmatpush3.bf16.msra.mxu0 %v493_v51  ;;  %v3933_v28 = vmov 0.0   ;;  %v492_v21 = vpack.c.bf16 %v3908_v24, %v3907_v20  ;;  %v1927_v19 = vld [vmem:[%s3654_s4 + $0x2] ss:$0 sm:$0xff] }
 0x240   :  { %v1633_v17 = vsel %vm1632_vm0, %v1631_v41, %v1357_v44  ;;  %v1615_v29 = vmax.f32 %v1611_v22, %v1612_v34  ;;  %v1616_v11 = vmax.f32 %v1613_v0, %v1614_v59  ;;  %2082 = vmatprep.subr.bf16.mxu0 %v3933_v28  ;;  %vm1634_vm4 = vcmask 1045504   ;;  %2102 = vmatprep.subr.bf16.mxu1 %v3933_v28  ;;  %v1936_v44 = vld [vmem:[%s3654_s4 + $0x3] ss:$0 sm:$0xff] }
 0x241   :  { %v1488_v37 = vmax.f32 %v1486_v56, %v1487_v55  ;;  %vm3934_vm2 = vmmov 0   ;;  %vm1636_vm15 = vcmask 1046528   ;;  %2103 = vmatpush3.bf16.msra.mxu1 %v2172_v5  ;;  %2189 = vrcp.f32 %v1650_v47 }
 0x242   :  { %v1617_v32 = vmax.f32 %v1615_v29, %v1616_v11  ;;  %vm1660_vm10 = vcmp.eq.s32.totalorder %v1659_v53, 1 }
 0x243   :  { %v1489_v60 = vrot.slane %v1488_v37, 1  ;;  %2083 = vmatpush3.bf16.msra.mxu0 %v492_v21 }
 0x244   :  { %v1618_v58 = vrot.slane %v1617_v32, 4  ;;  %2108 = vmatprep.subr.bf16.mxu0 %v3933_v28 }
 0x245   :  { %v1490_v26 = vmax.f32 %v1488_v37, %v1489_v60 }
 0x246   :  { %v1619_v49 = vmax.f32 %v1617_v32, %v1618_v58  ;;  %2085 = vmatmul.mubr.bf16.vlgmr.msra.gmra.mxu0 %v501_v16 }
 0x247   :  { %v1635_v4 = vsel %vm1634_vm4, %v1633_v17, %v1490_v26  ;;  %2124 = vmatprep.mubr.msk.bf16.mxu0 %vm3934_vm2, %v3933_v28  ;;  %2109 = vmatpush3.bf16.msra.mxu0 %v2173_v54 }
 0x248   :  { %v1620_v38 = vrot.slane %v1619_v49, 2  ;;  %2110 = vmatprep.subr.bf16.mxu0 %v3933_v28 }
 0x24a   :  { %v1621_v20 = vmax.f32 %v1619_v49, %v1620_v38 }
 0x24b   :  { %2111 = vmatpush3.bf16.msra.mxu0 %v2174_v43 }
 0x24c   :  { %v1622_v24 = vrot.slane %v1621_v20, 1  ;;  %2112 = vmatprep.subr.bf16.mxu0 %v3933_v28 }
 0x24e   :  { %v1623_v33 = vmax.f32 %v1621_v20, %v1622_v24  ;;  %v2190_v27 = vpop.eup %2189 }
 0x24f   :  { %2113 = vmatpush3.bf16.msra.mxu0 %v2175_v61 }
 0x250   :  { %v1637_v62 = vsel %vm1636_vm15, %v1635_v4, %v1623_v33  ;;  %2114 = vmatprep.subr.bf16.mxu0 %v3933_v28 }
 0x251   :  { %v1661_v40 = vsel %vm1660_vm10, %v1637_v62, 0.0 }
 0x253   :  { %2115 = vmatpush3.bf16.msra.mxu0 %v2176_v52 }
 0x254   :  { %2116 = vmatprep.subr.bf16.mxu0 %v3933_v28 }
 0x257   :  { %2117 = vmatpush3.bf16.msra.mxu0 %v2177_v6 }
 0x258   :  { %2118 = vmatprep.subr.bf16.mxu0 %v3933_v28 }
 0x25b   :  { %2119 = vmatpush3.bf16.msra.mxu0 %v2178_v35 }
 0x25c   :  { %2120 = vmatprep.subr.bf16.mxu0 %v3933_v28 }
 0x25f   :  { %2121 = vmatpush3.bf16.msra.mxu0 %v2179_v45 }
 0x260   :  { %2122 = vmatprep.subr.bf16.mxu0 %v3933_v28 }
 0x263   :  { %2123 = vmatpush3.bf16.msra.mxu0 %v2180_v7 }
 0x306   :  { %v536_v10 = vpop.f32.mrf.mxu0 }
 0x307   :  { %v1653_v23 = vmul.f32 %v2190_v27, %v536_v10 }
 0x308   :  { %v2086_v25 = vpop.f32.mrf.mxu0 }
 0x309   :  { %v1662_v63 = vadd.f32 %v1661_v40, %v1653_v23 }
 0x30a   :  { %v539_v13 = vpop.f32.mrf.mxu0 }
 0x30b   :  { %v1663_v46 = vpack.c.bf16 %v1662_v63, %v1662_v63 }
 0x30c   :  { %v2087_v36 = vpop.f32.mrf.mxu0 }
 0x30d   :  { %2105 = vmatmul.mubr.bf16.vlgmr.msra.gmra.mxu1 %v1663_v46 }
 0x3cd   :  { %v1784_v57 = vpop.f32.mrf.mxu1 }
 0x3ce   :  { %v1785_v39 = vadd.f32 %v1927_v19, %v1784_v57 }
 0x3cf   :  { %v2106_v3 = vpop.f32.mrf.mxu1 }
 0x3d0   :  { %v1790_v48 = vmax.f32 %v1785_v39, 0.0 }
 0x3d1   :  { %v1787_v2 = vpop.f32.mrf.mxu1 }
 0x3d2   :  { %v1791_v50 = vpack.c.bf16 %v1790_v48, %v1790_v48 }
 0x3d3   :  { %v2107_v30 = vpop.f32.mrf.mxu1 }
 0x3d4   :  { %2125 = vmatmul.mubr.bf16.vlgmr.msra.gmra.mxu0 %v1791_v50 }
 0x494   :  { %v1878_v31 = vpop.f32.mrf.mxu0 }
 0x495   :  { %v1879_v12 = vadd.f32 %v1936_v44, %v1878_v31 }
 0x496   :  { %v2126_v9 = vpop.f32.mrf.mxu0 }
 0x497   :  { %1884 = vst [vmem:[#allocation9] sm:$0xff] %v1879_v12 }
 0x498   :  { %v1881_v14 = vpop.f32.mrf.mxu0 }
 0x499   :  { %2242 = shalt.err (!%p2239_p0)
}
 0x49a   :  { %1894 = dma.vmem_to_hbm [thread:$0]  %s1892_s14, 128, %s3655_s5, [#allocation6]   ;;  %v2127_v18 = vpop.f32.mrf.mxu0 }
 0x49b   :  { %2255 = dma.done.wait [#allocation6], 128  }
 0x49c   :  { %2256 = vsyncadd [#allocation6], 4294967168 }
 0x49d   :  { %1898 = vsyncpa [#allocation5], 1 }
 0x49e   :  { %1899 = vsyncpa [#allocation8], 1 }
 0x49f   :  { %1900 = vsyncpa [#allocation6], 1 }

</bundles_post_ra>
